<compile_context>
chip_gen: v6e
topology: v6e:2x2x1
jax: 0.10.0
libtpu: 0.0.40
codegen_flags: <defaults>
</compile_context>

<pallas_src>
import functools

import numpy as np

import jax
import jax.numpy as jnp
from jax.experimental import pallas as pl
from jax.experimental.pallas import tpu as pltpu


# --------------------------------------------------------------------------- #
# Kernel
# --------------------------------------------------------------------------- #
def pepx_kernel(x_ref, xh_ref, m_ref, w12_ref, b12_ref, wdw_ref, bdw_ref,
                w34_ref, b34_ref, o_ref, *, band_rows, width):
    """One (batch, row-band) tile, channel-major flat-spatial layout.

    x_ref  : (Cin,  BR*W)  band activations (lane-dense)
    xh_ref : (2, Cin, W)   halo: image row just above / just below the band
    m_ref  : (4, BR*W)     {band row0, band last row, col-1 valid, col+1 valid}
    w12_ref: (Cout, Cin)   fused projection+expansion weight (transposed)
    b12_ref: (Cout, 1)     fused bias
    wdw_ref: (Cout, 9)     depthwise 3x3 taps, tap t = (a+1)*3 + (b+1)
    bdw_ref: (Cout, 1)
    w34_ref: (Cout, Cout)  fused second_projection+extension weight
    b34_ref: (Cout, 1)
    o_ref  : (Cout, BR*W)
    """
    f32 = jnp.float32
    W = width
    L = band_rows * W
    C = o_ref.shape[0]
    band = pl.program_id(1)
    num_bands = pl.num_programs(1)

    # ---- fused projection + expansion (two 1x1 convs, no ReLU between) -----
    e = jnp.dot(w12_ref[...], x_ref[...], preferred_element_type=f32)
    e = jnp.maximum(e + b12_ref[...], 0.0)                        # (C, L) f32

    # Halo rows of e, recomputed from the two neighbour rows of x (two tiny
    # Cout x Cin x W matmuls).  Rows outside the image are zeroed, which is
    # exactly the depthwise zero-padding (e >= 0 so zero == padded-conv value).
    top_ok = (band > 0).astype(f32)
    bot_ok = (band < num_bands - 1).astype(f32)
    e_top = jnp.maximum(
        jnp.dot(w12_ref[...], xh_ref[0], preferred_element_type=f32)
        + b12_ref[...], 0.0) * top_ok                             # (C, W)
    e_bot = jnp.maximum(
        jnp.dot(w12_ref[...], xh_ref[1], preferred_element_type=f32)
        + b12_ref[...], 0.0) * bot_ok                             # (C, W)

    # ---- depthwise 3x3 (padding=1, groups=C) -------------------------------
    # Host-precomputed multiplicative masks: no iota / // / % / compares here.
    row0 = m_ref[0:1, :]         # 1 at the band's first row
    rowlast = m_ref[1:2, :]      # 1 at the band's last row
    col_l = m_ref[2:3, :]        # valid when reading col-1  (b = -1)
    col_r = m_ref[3:4, :]        # valid when reading col+1  (b = +1)

    # Three row-shifted views built once: 2 XLU rolls + halo splice (tile is
    # the documented pltpu.repeat replacement; masked to the boundary row).
    e_up = (pltpu.roll(e, shift=W, axis=1) * (1.0 - row0)
            + jnp.tile(e_top, (1, band_rows)) * row0)             # e[r-1, c]
    e_dn = (pltpu.roll(e, shift=L - W, axis=1) * (1.0 - rowlast)
            + jnp.tile(e_bot, (1, band_rows)) * rowlast)          # e[r+1, c]

    wdw = wdw_ref[...]                                            # (C, 9) f32
    acc = jnp.zeros((C, L), f32)
    for a, src in ((-1, e_up), (0, e), (1, e_dn)):
        for b in (-1, 0, 1):
            t = (a + 1) * 3 + (b + 1)
            if b == 0:
                term = src
            elif b == -1:
                term = pltpu.roll(src, shift=1, axis=1) * col_l       # src[., c-1]
            else:
                term = pltpu.roll(src, shift=L - 1, axis=1) * col_r   # src[., c+1]
            acc = acc + term * wdw[:, t:t + 1]
    d = jnp.maximum(acc + bdw_ref[...], 0.0)                      # (C, L)

    # ---- fused second_projection + extension + ReLU ------------------------
    y = jnp.dot(w34_ref[...], d.astype(w34_ref.dtype),
                preferred_element_type=f32)
    o_ref[...] = jnp.maximum(y + b34_ref[...], 0.0).astype(o_ref.dtype)


# --------------------------------------------------------------------------- #
# Host-side helpers
# --------------------------------------------------------------------------- #
def _band_masks(band_rows, width):
    """{0,1} masks, shape (4, band_rows*width), precomputed on the host."""
    p = np.arange(band_rows * width)
    row = p // width
    col = p % width
    m = np.stack([
        row == 0,
        row == band_rows - 1,
        col >= 1,
        col <= width - 2,
    ]).astype(np.float32)
    return jnp.asarray(m)


def _choose_band_rows(H, W, c_in, c_out, act_bytes=4,
                      vmem_budget_bytes=8 * 1024 * 1024):
    """Largest row band that (a) divides H, (b) is lane-dense (band_rows*W a
    multiple of 128) and (c) fits a rough per-step VMEM estimate (double
    buffered x/out blocks + f32 temporaries).  Halve the budget on v7x
    (64 MiB VMEM) relative to v5e/v6e (128 MiB)."""
    cands = [r for r in range(1, H + 1) if H % r == 0 and (r * W) % 128 == 0]
    if not cands:
        return H          # fall back to whole image (full-extent block is legal)

    def est(r):
        L = r * W
        return 2 * (c_in + c_out) * L * act_bytes + 6 * c_out * L * 4

    fitting = [r for r in cands if est(r) <= vmem_budget_bytes]
    return max(fitting) if fitting else min(cands)


def pepx_forward(x_nchw, params, *, band_rows=None,
                 param_dtype=jnp.float32,
                 vmem_budget_bytes=8 * 1024 * 1024,
                 vmem_limit_bytes=48 * 1024 * 1024):
    """PEPX forward.  x_nchw: (N, Cin, H, W) f32 -> (N, Cout, H, W) f32.

    param_dtype=jnp.bfloat16 runs both MXU matmuls with bf16 operands (f32
    accumulation, f32 depthwise) — the fast path on v5e/v6e/v7x.
    """
    w1, b1, w2, b2, wdw, bdw, w3, b3, w4, b4 = params
    N, Cin, H, W = x_nchw.shape
    Cout = w2.shape[1]
    P = H * W

    act_bytes = jnp.dtype(param_dtype).itemsize
    if band_rows is None:
        band_rows = _choose_band_rows(H, W, Cin, Cout, act_bytes,
                                      vmem_budget_bytes)
    assert H % band_rows == 0, "band_rows must divide H"
    assert (band_rows * W) % 128 == 0 or band_rows == H, \
        "row band must be lane-dense (band_rows*W % 128 == 0)"
    nb = H // band_rows
    L = band_rows * W

    # Offline algebraic fusion of the adjacent 1x1 convs (exact: no ReLU
    # between projection/expansion nor between second_projection/extension).
    # NOTE(v5e): with a 128-deep MXU and hidden = Cout/4, the UNFUSED pair can
    # be cheaper at large Cout — measure per generation before committing.
    w12t = (w1 @ w2).T.astype(param_dtype)           # (Cout, Cin)
    b12c = (b1 @ w2 + b2).T.astype(jnp.float32)      # (Cout, 1)
    w34t = (w3 @ w4).T.astype(param_dtype)           # (Cout, Cout)
    b34c = (b3 @ w4 + b4).T.astype(jnp.float32)
    wdwt = wdw.T.astype(jnp.float32)                 # (Cout, 9)  VPU-side, f32
    bdwc = bdw.T.astype(jnp.float32)

    x_cast = x_nchw.astype(param_dtype)
    x_flat = x_cast.reshape(N, Cin, P)               # free reshape, lane-dense

    # Per-band halo rows (image rows just above / below each band), gathered
    # once by XLA: (N, nb, 2, Cin, W).  Border duplicates (clamped indices)
    # are zeroed inside the kernel, so bands stay fully independent.
    starts = np.arange(nb) * band_rows
    top_idx = np.maximum(starts - 1, 0)
    bot_idx = np.minimum(starts + band_rows, H - 1)
    x_top = jnp.transpose(x_cast[:, :, top_idx, :], (0, 2, 1, 3))
    x_bot = jnp.transpose(x_cast[:, :, bot_idx, :], (0, 2, 1, 3))
    x_halo = jnp.stack([x_top, x_bot], axis=2)       # (N, nb, 2, Cin, W)

    masks = _band_masks(band_rows, W)                # (4, L) f32, host-built

    kernel = functools.partial(pepx_kernel, band_rows=band_rows, width=W)
    const = lambda n, b: (0, 0)

    # Further knobs (not exercised at demo shapes): pl.Buffered(2..3) on the
    # streamed x/out specs and Buffered(1) on the constant weight specs; for
    # tiny images, fold several batch elements per step to amortize the
    # ~0.35 us/step pipeline overhead.
    out_flat = pl.pallas_call(
        kernel,
        out_shape=jax.ShapeDtypeStruct((N, Cout, P), jnp.float32),
        grid_spec=pltpu.PrefetchScalarGridSpec(
            num_scalar_prefetch=0,
            grid=(N, nb),
            in_specs=[
                pl.BlockSpec((None, Cin, L), lambda n, b: (n, 0, b)),
                pl.BlockSpec((None, None, 2, Cin, W),
                             lambda n, b: (n, b, 0, 0, 0)),
                pl.BlockSpec(masks.shape, const),
                pl.BlockSpec(w12t.shape, const),
                pl.BlockSpec(b12c.shape, const),
                pl.BlockSpec(wdwt.shape, const),
                pl.BlockSpec(bdwc.shape, const),
                pl.BlockSpec(w34t.shape, const),
                pl.BlockSpec(b34c.shape, const),
            ],
            out_specs=pl.BlockSpec((None, Cout, L), lambda n, b: (n, 0, b)),
        ),
        compiler_params=pltpu.CompilerParams(
            # Both axes parallel: v7x shards (batch x band) across its 2 TCs
            # even when N == 1; no effect on v5e/v6e.
            dimension_semantics=("parallel", "parallel"),
            vmem_limit_bytes=vmem_limit_bytes),
    )(x_flat, x_halo, masks, w12t, b12c, wdwt, bdwc, w34t, b34c)

    return out_flat.reshape(N, Cout, H, W)


# --------------------------------------------------------------------------- #
# Params + pure-JAX reference (unfused weights — validates fusion & depthwise)
# --------------------------------------------------------------------------- #
def init_pepx_params(key, in_channels, out_channels, expansion_factor=4):
    """nn.Conv2d-style uniform init.  1x1 weights stored as (in, out) matmul
    matrices; depthwise (out,1,3,3) stored as (9, out); biases as (1, C)."""
    hidden = int(out_channels / expansion_factor)
    keys = jax.random.split(key, 10)

    def u(k, shape, fan_in):
        bound = 1.0 / jnp.sqrt(jnp.asarray(fan_in, jnp.float32))
        return jax.random.uniform(k, shape, jnp.float32, -bound, bound)

    w1 = u(keys[0], (in_channels, hidden), in_channels)        # projection
    b1 = u(keys[1], (1, hidden), in_channels)
    w2 = u(keys[2], (hidden, out_channels), hidden)             # expansion
    b2 = u(keys[3], (1, out_channels), hidden)
    wdw = u(keys[4], (9, out_channels), 9)                      # depthwise 3x3
    bdw = u(keys[5], (1, out_channels), 9)
    w3 = u(keys[6], (out_channels, hidden), out_channels)       # second_projection
    b3 = u(keys[7], (1, hidden), out_channels)
    w4 = u(keys[8], (hidden, out_channels), hidden)             # extension
    b4 = u(keys[9], (1, out_channels), hidden)
    return (w1, b1, w2, b2, wdw, bdw, w3, b3, w4, b4)


def pepx_reference(x_nchw, params):
    w1, b1, w2, b2, wdw, bdw, w3, b3, w4, b4 = params
    x = jnp.transpose(x_nchw, (0, 2, 3, 1))
    N, H, W, _ = x.shape

    def conv1x1(t, w, b):
        return jnp.einsum('nhwc,cd->nhwd', t, w) + b.reshape(1, 1, 1, -1)

    h = conv1x1(x, w1, b1)
    e = jax.nn.relu(conv1x1(h, w2, b2))
    ep = jnp.pad(e, ((0, 0), (1, 1), (1, 1), (0, 0)))
    acc = jnp.zeros_like(e)
    for di in range(3):
        for dj in range(3):
            acc = acc + ep[:, di:di + H, dj:dj + W, :] * wdw[di * 3 + dj]
    d = jax.nn.relu(acc + bdw.reshape(1, 1, 1, -1))
    s = conv1x1(d, w3, b3)
    y = jax.nn.relu(conv1x1(s, w4, b4))
    return jnp.transpose(y, (0, 3, 1, 2))


# --------------------------------------------------------------------------- #
if __name__ == "__main__":
    key = jax.random.PRNGKey(0)
    k_x, k_p = jax.random.split(key)

    N, Cin, H, W = 2, 4, 16, 16
    Cout = 32  # hidden = Cout / 4 = 8

    x = jax.random.normal(k_x, (N, Cin, H, W), jnp.float32)
    params = init_pepx_params(k_p, Cin, Cout, expansion_factor=4)

    ref = jax.block_until_ready(pepx_reference(x, params))

    # f32 path with 2 row-bands of 8 rows each (exercises the halo machinery).
    out = jax.block_until_ready(pepx_forward(x, params, band_rows=8))
    assert out.shape == (N, Cout, H, W)
    assert jnp.allclose(out, ref, rtol=1e-4, atol=1e-4), "f32 mismatch vs reference"

    # bf16 MXU-operand fast path (v5e/v6e/v7x), looser tolerance.
    out_bf16 = jax.block_until_ready(
        pepx_forward(x, params, band_rows=8, param_dtype=jnp.bfloat16))
    assert jnp.allclose(out_bf16, ref, rtol=5e-2, atol=5e-2), \
        "bf16 mismatch vs reference"

    print("KERNEL_OK")
</pallas_src>

<mosaic_0001>
module attributes {stable_mosaic.version = 11 : i64} {
  func.func @pepx_kernel(%arg0: i32, %arg1: i32, %arg2: memref<1x4x128xf32, #tpu.memory_space<vmem>>, %arg3: memref<1x1x2x4x16xf32, #tpu.memory_space<vmem>>, %arg4: memref<4x128xf32, #tpu.memory_space<vmem>>, %arg5: memref<32x4xf32, #tpu.memory_space<vmem>>, %arg6: memref<32x1xf32, #tpu.memory_space<vmem>>, %arg7: memref<32x9xf32, #tpu.memory_space<vmem>>, %arg8: memref<32x1xf32, #tpu.memory_space<vmem>>, %arg9: memref<32x32xf32, #tpu.memory_space<vmem>>, %arg10: memref<32x1xf32, #tpu.memory_space<vmem>>, %arg11: memref<1x32x128xf32, #tpu.memory_space<vmem>>) attributes {dimension_semantics = [#tpu.dimension_semantics<parallel>, #tpu.dimension_semantics<parallel>], iteration_bounds = array<i64: 2, 2>, scalar_prefetch = 0 : i64, scratch_operands = 0 : i64, tpu.core_type = #tpu.core_type<tc>, window_params = [{transform_indices = @transform_0, window_bounds = array<i64: 1, 4, 128>}, {transform_indices = @transform_1, window_bounds = array<i64: 1, 1, 2, 4, 16>}, {pipeline_mode = #tpu.pipeline_mode<synchronous>, transform_indices = @transform_2, window_bounds = array<i64: 4, 128>}, {pipeline_mode = #tpu.pipeline_mode<synchronous>, transform_indices = @transform_3, window_bounds = array<i64: 32, 4>}, {pipeline_mode = #tpu.pipeline_mode<synchronous>, transform_indices = @transform_4, window_bounds = array<i64: 32, 1>}, {pipeline_mode = #tpu.pipeline_mode<synchronous>, transform_indices = @transform_5, window_bounds = array<i64: 32, 9>}, {pipeline_mode = #tpu.pipeline_mode<synchronous>, transform_indices = @transform_6, window_bounds = array<i64: 32, 1>}, {pipeline_mode = #tpu.pipeline_mode<synchronous>, transform_indices = @transform_7, window_bounds = array<i64: 32, 32>}, {pipeline_mode = #tpu.pipeline_mode<synchronous>, transform_indices = @transform_8, window_bounds = array<i64: 32, 1>}, {transform_indices = @transform_9, window_bounds = array<i64: 1, 32, 128>}]} {
    %c0 = arith.constant 0 : index
    %c0_0 = arith.constant 0 : index
    %0 = vector.load %arg5[%c0, %c0_0] : memref<32x4xf32, #tpu.memory_space<vmem>>, vector<32x4xf32>
    %c0_1 = arith.constant 0 : index
    %c0_2 = arith.constant 0 : index
    %c0_3 = arith.constant 0 : index
    %1 = vector.load %arg2[%c0_1, %c0_2, %c0_3] : memref<1x4x128xf32, #tpu.memory_space<vmem>>, vector<1x4x128xf32>
    %2 = vector.shape_cast %1 : vector<1x4x128xf32> to vector<4x128xf32>
    %cst = arith.constant dense<0.000000e+00> : vector<32x128xf32>
    %3 = tpu.matmul %0, %2, %cst {dimension_numbers = #tpu.dot_dimension_numbers<[1], [0], [0], [1], [0, 0, 1, 1], [], []>} : vector<32x4xf32>, vector<4x128xf32>, vector<32x128xf32> -> vector<32x128xf32>
    %c0_4 = arith.constant 0 : index
    %c0_5 = arith.constant 0 : index
    %4 = vector.load %arg6[%c0_4, %c0_5] : memref<32x1xf32, #tpu.memory_space<vmem>>, vector<32x1xf32>
    %5 = vector.broadcast %4 : vector<32x1xf32> to vector<32x128xf32>
    %6 = arith.addf %3, %5 : vector<32x128xf32>
    %cst_6 = arith.constant 0.000000e+00 : f32
    %7 = vector.broadcast %cst_6 : f32 to vector<32x128xf32>
    %8 = arith.maximumf %6, %7 : vector<32x128xf32>
    %c0_i32 = arith.constant 0 : i32
    %9 = arith.cmpi sgt, %arg1, %c0_i32 : i32
    %10 = arith.extui %9 : i1 to i32
    %11 = arith.sitofp %10 : i32 to f32
    %c1_i32 = arith.constant 1 : i32
    %12 = arith.cmpi slt, %arg1, %c1_i32 : i32
    %13 = arith.extui %12 : i1 to i32
    %14 = arith.sitofp %13 : i32 to f32
    %c0_7 = arith.constant 0 : index
    %c0_8 = arith.constant 0 : index
    %15 = vector.load %arg5[%c0_7, %c0_8] : memref<32x4xf32, #tpu.memory_space<vmem>>, vector<32x4xf32>
    %c0_9 = arith.constant 0 : index
    %c0_10 = arith.constant 0 : index
    %c0_11 = arith.constant 0 : index
    %c0_12 = arith.constant 0 : index
    %c0_13 = arith.constant 0 : index
    %16 = vector.load %arg3[%c0_9, %c0_10, %c0_11, %c0_12, %c0_13] : memref<1x1x2x4x16xf32, #tpu.memory_space<vmem>>, vector<1x1x1x4x16xf32>
    %17 = vector.shape_cast %16 : vector<1x1x1x4x16xf32> to vector<4x16xf32>
    %cst_14 = arith.constant dense<0.000000e+00> : vector<32x16xf32>
    %18 = tpu.matmul %15, %17, %cst_14 {dimension_numbers = #tpu.dot_dimension_numbers<[1], [0], [0], [1], [0, 0, 1, 1], [], []>} : vector<32x4xf32>, vector<4x16xf32>, vector<32x16xf32> -> vector<32x16xf32>
    %c0_15 = arith.constant 0 : index
    %c0_16 = arith.constant 0 : index
    %19 = vector.load %arg6[%c0_15, %c0_16] : memref<32x1xf32, #tpu.memory_space<vmem>>, vector<32x1xf32>
    %20 = vector.broadcast %19 : vector<32x1xf32> to vector<32x16xf32>
    %21 = arith.addf %18, %20 : vector<32x16xf32>
    %cst_17 = arith.constant 0.000000e+00 : f32
    %22 = vector.broadcast %cst_17 : f32 to vector<32x16xf32>
    %23 = arith.maximumf %21, %22 : vector<32x16xf32>
    %24 = vector.broadcast %11 : f32 to vector<32x16xf32>
    %25 = arith.mulf %23, %24 : vector<32x16xf32>
    %c0_18 = arith.constant 0 : index
    %c0_19 = arith.constant 0 : index
    %26 = vector.load %arg5[%c0_18, %c0_19] : memref<32x4xf32, #tpu.memory_space<vmem>>, vector<32x4xf32>
    %c0_20 = arith.constant 0 : index
    %c0_21 = arith.constant 0 : index
    %c1 = arith.constant 1 : index
    %c0_22 = arith.constant 0 : index
    %c0_23 = arith.constant 0 : index
    %27 = vector.load %arg3[%c0_20, %c0_21, %c1, %c0_22, %c0_23] : memref<1x1x2x4x16xf32, #tpu.memory_space<vmem>>, vector<1x1x1x4x16xf32>
    %28 = vector.shape_cast %27 : vector<1x1x1x4x16xf32> to vector<4x16xf32>
    %cst_24 = arith.constant dense<0.000000e+00> : vector<32x16xf32>
    %29 = tpu.matmul %26, %28, %cst_24 {dimension_numbers = #tpu.dot_dimension_numbers<[1], [0], [0], [1], [0, 0, 1, 1], [], []>} : vector<32x4xf32>, vector<4x16xf32>, vector<32x16xf32> -> vector<32x16xf32>
    %c0_25 = arith.constant 0 : index
    %c0_26 = arith.constant 0 : index
    %30 = vector.load %arg6[%c0_25, %c0_26] : memref<32x1xf32, #tpu.memory_space<vmem>>, vector<32x1xf32>
    %31 = vector.broadcast %30 : vector<32x1xf32> to vector<32x16xf32>
    %32 = arith.addf %29, %31 : vector<32x16xf32>
    %cst_27 = arith.constant 0.000000e+00 : f32
    %33 = vector.broadcast %cst_27 : f32 to vector<32x16xf32>
    %34 = arith.maximumf %32, %33 : vector<32x16xf32>
    %35 = vector.broadcast %14 : f32 to vector<32x16xf32>
    %36 = arith.mulf %34, %35 : vector<32x16xf32>
    %c0_28 = arith.constant 0 : index
    %c0_29 = arith.constant 0 : index
    %37 = vector.load %arg4[%c0_28, %c0_29] : memref<4x128xf32, #tpu.memory_space<vmem>>, vector<1x128xf32>
    %c1_30 = arith.constant 1 : index
    %c0_31 = arith.constant 0 : index
    %38 = vector.load %arg4[%c1_30, %c0_31] : memref<4x128xf32, #tpu.memory_space<vmem>>, vector<1x128xf32>
    %c2 = arith.constant 2 : index
    %c0_32 = arith.constant 0 : index
    %39 = vector.load %arg4[%c2, %c0_32] : memref<4x128xf32, #tpu.memory_space<vmem>>, vector<1x128xf32>
    %c3 = arith.constant 3 : index
    %c0_33 = arith.constant 0 : index
    %40 = vector.load %arg4[%c3, %c0_33] : memref<4x128xf32, #tpu.memory_space<vmem>>, vector<1x128xf32>
    %c16_i32 = arith.constant 16 : i32
    %41 = tpu.dynamic_rotate %8 by %c16_i32 dim 1 : vector<32x128xf32>, i32 -> vector<32x128xf32>
    %cst_34 = arith.constant 1.000000e+00 : f32
    %42 = vector.broadcast %cst_34 : f32 to vector<1x128xf32>
    %43 = arith.subf %42, %37 : vector<1x128xf32>
    %44 = vector.broadcast %43 : vector<1x128xf32> to vector<32x128xf32>
    %45 = arith.mulf %41, %44 : vector<32x128xf32>
    %46 = tpu.concatenate %25, %25, %25, %25, %25, %25, %25, %25 in 1 : vector<32x16xf32>, vector<32x16xf32>, vector<32x16xf32>, vector<32x16xf32>, vector<32x16xf32>, vector<32x16xf32>, vector<32x16xf32>, vector<32x16xf32> -> vector<32x128xf32>
    %47 = vector.broadcast %37 : vector<1x128xf32> to vector<32x128xf32>
    %48 = arith.mulf %46, %47 : vector<32x128xf32>
    %49 = arith.addf %45, %48 : vector<32x128xf32>
    %c112_i32 = arith.constant 112 : i32
    %50 = tpu.dynamic_rotate %8 by %c112_i32 dim 1 : vector<32x128xf32>, i32 -> vector<32x128xf32>
    %cst_35 = arith.constant 1.000000e+00 : f32
    %51 = vector.broadcast %cst_35 : f32 to vector<1x128xf32>
    %52 = arith.subf %51, %38 : vector<1x128xf32>
    %53 = vector.broadcast %52 : vector<1x128xf32> to vector<32x128xf32>
    %54 = arith.mulf %50, %53 : vector<32x128xf32>
    %55 = tpu.concatenate %36, %36, %36, %36, %36, %36, %36, %36 in 1 : vector<32x16xf32>, vector<32x16xf32>, vector<32x16xf32>, vector<32x16xf32>, vector<32x16xf32>, vector<32x16xf32>, vector<32x16xf32>, vector<32x16xf32> -> vector<32x128xf32>
    %56 = vector.broadcast %38 : vector<1x128xf32> to vector<32x128xf32>
    %57 = arith.mulf %55, %56 : vector<32x128xf32>
    %58 = arith.addf %54, %57 : vector<32x128xf32>
    %c0_36 = arith.constant 0 : index
    %c0_37 = arith.constant 0 : index
    %59 = vector.load %arg7[%c0_36, %c0_37] : memref<32x9xf32, #tpu.memory_space<vmem>>, vector<32x9xf32>
    %cst_38 = arith.constant 0.000000e+00 : f32
    %60 = vector.broadcast %cst_38 : f32 to vector<32x128xf32>
    %c1_i32_39 = arith.constant 1 : i32
    %61 = tpu.dynamic_rotate %49 by %c1_i32_39 dim 1 : vector<32x128xf32>, i32 -> vector<32x128xf32>
    %62 = vector.broadcast %39 : vector<1x128xf32> to vector<32x128xf32>
    %63 = arith.mulf %61, %62 : vector<32x128xf32>
    %64 = vector.extract_strided_slice %59 {offsets = [0, 0], sizes = [32, 1], strides = [1, 1]} : vector<32x9xf32> to vector<32x1xf32>
    %65 = vector.broadcast %64 : vector<32x1xf32> to vector<32x128xf32>
    %66 = arith.mulf %63, %65 : vector<32x128xf32>
    %67 = arith.addf %60, %66 : vector<32x128xf32>
    %68 = vector.extract_strided_slice %59 {offsets = [0, 1], sizes = [32, 1], strides = [1, 1]} : vector<32x9xf32> to vector<32x1xf32>
    %69 = vector.broadcast %68 : vector<32x1xf32> to vector<32x128xf32>
    %70 = arith.mulf %49, %69 : vector<32x128xf32>
    %71 = arith.addf %67, %70 : vector<32x128xf32>
    %c127_i32 = arith.constant 127 : i32
    %72 = tpu.dynamic_rotate %49 by %c127_i32 dim 1 : vector<32x128xf32>, i32 -> vector<32x128xf32>
    %73 = vector.broadcast %40 : vector<1x128xf32> to vector<32x128xf32>
    %74 = arith.mulf %72, %73 : vector<32x128xf32>
    %75 = vector.extract_strided_slice %59 {offsets = [0, 2], sizes = [32, 1], strides = [1, 1]} : vector<32x9xf32> to vector<32x1xf32>
    %76 = vector.broadcast %75 : vector<32x1xf32> to vector<32x128xf32>
    %77 = arith.mulf %74, %76 : vector<32x128xf32>
    %78 = arith.addf %71, %77 : vector<32x128xf32>
    %c1_i32_40 = arith.constant 1 : i32
    %79 = tpu.dynamic_rotate %8 by %c1_i32_40 dim 1 : vector<32x128xf32>, i32 -> vector<32x128xf32>
    %80 = vector.broadcast %39 : vector<1x128xf32> to vector<32x128xf32>
    %81 = arith.mulf %79, %80 : vector<32x128xf32>
    %82 = vector.extract_strided_slice %59 {offsets = [0, 3], sizes = [32, 1], strides = [1, 1]} : vector<32x9xf32> to vector<32x1xf32>
    %83 = vector.broadcast %82 : vector<32x1xf32> to vector<32x128xf32>
    %84 = arith.mulf %81, %83 : vector<32x128xf32>
    %85 = arith.addf %78, %84 : vector<32x128xf32>
    %86 = vector.extract_strided_slice %59 {offsets = [0, 4], sizes = [32, 1], strides = [1, 1]} : vector<32x9xf32> to vector<32x1xf32>
    %87 = vector.broadcast %86 : vector<32x1xf32> to vector<32x128xf32>
    %88 = arith.mulf %8, %87 : vector<32x128xf32>
    %89 = arith.addf %85, %88 : vector<32x128xf32>
    %c127_i32_41 = arith.constant 127 : i32
    %90 = tpu.dynamic_rotate %8 by %c127_i32_41 dim 1 : vector<32x128xf32>, i32 -> vector<32x128xf32>
    %91 = vector.broadcast %40 : vector<1x128xf32> to vector<32x128xf32>
    %92 = arith.mulf %90, %91 : vector<32x128xf32>
    %93 = vector.extract_strided_slice %59 {offsets = [0, 5], sizes = [32, 1], strides = [1, 1]} : vector<32x9xf32> to vector<32x1xf32>
    %94 = vector.broadcast %93 : vector<32x1xf32> to vector<32x128xf32>
    %95 = arith.mulf %92, %94 : vector<32x128xf32>
    %96 = arith.addf %89, %95 : vector<32x128xf32>
    %c1_i32_42 = arith.constant 1 : i32
    %97 = tpu.dynamic_rotate %58 by %c1_i32_42 dim 1 : vector<32x128xf32>, i32 -> vector<32x128xf32>
    %98 = vector.broadcast %39 : vector<1x128xf32> to vector<32x128xf32>
    %99 = arith.mulf %97, %98 : vector<32x128xf32>
    %100 = vector.extract_strided_slice %59 {offsets = [0, 6], sizes = [32, 1], strides = [1, 1]} : vector<32x9xf32> to vector<32x1xf32>
    %101 = vector.broadcast %100 : vector<32x1xf32> to vector<32x128xf32>
    %102 = arith.mulf %99, %101 : vector<32x128xf32>
    %103 = arith.addf %96, %102 : vector<32x128xf32>
    %104 = vector.extract_strided_slice %59 {offsets = [0, 7], sizes = [32, 1], strides = [1, 1]} : vector<32x9xf32> to vector<32x1xf32>
    %105 = vector.broadcast %104 : vector<32x1xf32> to vector<32x128xf32>
    %106 = arith.mulf %58, %105 : vector<32x128xf32>
    %107 = arith.addf %103, %106 : vector<32x128xf32>
    %c127_i32_43 = arith.constant 127 : i32
    %108 = tpu.dynamic_rotate %58 by %c127_i32_43 dim 1 : vector<32x128xf32>, i32 -> vector<32x128xf32>
    %109 = vector.broadcast %40 : vector<1x128xf32> to vector<32x128xf32>
    %110 = arith.mulf %108, %109 : vector<32x128xf32>
    %111 = vector.extract_strided_slice %59 {offsets = [0, 8], sizes = [32, 1], strides = [1, 1]} : vector<32x9xf32> to vector<32x1xf32>
    %112 = vector.broadcast %111 : vector<32x1xf32> to vector<32x128xf32>
    %113 = arith.mulf %110, %112 : vector<32x128xf32>
    %114 = arith.addf %107, %113 : vector<32x128xf32>
    %c0_44 = arith.constant 0 : index
    %c0_45 = arith.constant 0 : index
    %115 = vector.load %arg8[%c0_44, %c0_45] : memref<32x1xf32, #tpu.memory_space<vmem>>, vector<32x1xf32>
    %116 = vector.broadcast %115 : vector<32x1xf32> to vector<32x128xf32>
    %117 = arith.addf %114, %116 : vector<32x128xf32>
    %cst_46 = arith.constant 0.000000e+00 : f32
    %118 = vector.broadcast %cst_46 : f32 to vector<32x128xf32>
    %119 = arith.maximumf %117, %118 : vector<32x128xf32>
    %c0_47 = arith.constant 0 : index
    %c0_48 = arith.constant 0 : index
    %120 = vector.load %arg9[%c0_47, %c0_48] : memref<32x32xf32, #tpu.memory_space<vmem>>, vector<32x32xf32>
    %cst_49 = arith.constant dense<0.000000e+00> : vector<32x128xf32>
    %121 = tpu.matmul %120, %119, %cst_49 {dimension_numbers = #tpu.dot_dimension_numbers<[1], [0], [0], [1], [0, 0, 1, 1], [], []>} : vector<32x32xf32>, vector<32x128xf32>, vector<32x128xf32> -> vector<32x128xf32>
    %c0_50 = arith.constant 0 : index
    %c0_51 = arith.constant 0 : index
    %122 = vector.load %arg10[%c0_50, %c0_51] : memref<32x1xf32, #tpu.memory_space<vmem>>, vector<32x1xf32>
    %123 = vector.broadcast %122 : vector<32x1xf32> to vector<32x128xf32>
    %124 = arith.addf %121, %123 : vector<32x128xf32>
    %cst_52 = arith.constant 0.000000e+00 : f32
    %125 = vector.broadcast %cst_52 : f32 to vector<32x128xf32>
    %126 = arith.maximumf %124, %125 : vector<32x128xf32>
    %c0_53 = arith.constant 0 : index
    %c0_54 = arith.constant 0 : index
    %c0_55 = arith.constant 0 : index
    %127 = vector.load %arg11[%c0_53, %c0_54, %c0_55] : memref<1x32x128xf32, #tpu.memory_space<vmem>>, vector<1x32x128xf32>
    %128 = vector.shape_cast %127 : vector<1x32x128xf32> to vector<32x128xf32>
    %129 = vector.shape_cast %126 : vector<32x128xf32> to vector<1x32x128xf32>
    tpu.vector_store %arg11[%c0_53, %c0_54, %c0_55], %129 {strides = array<i32>} : memref<1x32x128xf32, #tpu.memory_space<vmem>>, vector<1x32x128xf32>,
    return
  }
  func.func @transform_0(%arg0: i32, %arg1: i32) -> (i32, i32, i32) {
    %c0_i32 = arith.constant 0 : i32
    %c0_i32_0 = arith.constant 0 : i32
    return %arg0, %c0_i32, %arg1 : i32, i32, i32
  }
  func.func @transform_1(%arg0: i32, %arg1: i32) -> (i32, i32, i32, i32, i32) {
    %c0_i32 = arith.constant 0 : i32
    %c0_i32_0 = arith.constant 0 : i32
    %c0_i32_1 = arith.constant 0 : i32
    %c0_i32_2 = arith.constant 0 : i32
    return %arg0, %arg1, %c0_i32, %c0_i32_0, %c0_i32_1 : i32, i32, i32, i32, i32
  }
  func.func @transform_2(%arg0: i32, %arg1: i32) -> (i32, i32) {
    %c0_i32 = arith.constant 0 : i32
    %c0_i32_0 = arith.constant 0 : i32
    %c0_i32_1 = arith.constant 0 : i32
    return %c0_i32, %c0_i32_0 : i32, i32
  }
  func.func @transform_3(%arg0: i32, %arg1: i32) -> (i32, i32) {
    %c0_i32 = arith.constant 0 : i32
    %c0_i32_0 = arith.constant 0 : i32
    %c0_i32_1 = arith.constant 0 : i32
    return %c0_i32, %c0_i32_0 : i32, i32
  }
  func.func @transform_4(%arg0: i32, %arg1: i32) -> (i32, i32) {
    %c0_i32 = arith.constant 0 : i32
    %c0_i32_0 = arith.constant 0 : i32
    %c0_i32_1 = arith.constant 0 : i32
    return %c0_i32, %c0_i32_0 : i32, i32
  }
  func.func @transform_5(%arg0: i32, %arg1: i32) -> (i32, i32) {
    %c0_i32 = arith.constant 0 : i32
    %c0_i32_0 = arith.constant 0 : i32
    %c0_i32_1 = arith.constant 0 : i32
    return %c0_i32, %c0_i32_0 : i32, i32
  }
  func.func @transform_6(%arg0: i32, %arg1: i32) -> (i32, i32) {
    %c0_i32 = arith.constant 0 : i32
    %c0_i32_0 = arith.constant 0 : i32
    %c0_i32_1 = arith.constant 0 : i32
    return %c0_i32, %c0_i32_0 : i32, i32
  }
  func.func @transform_7(%arg0: i32, %arg1: i32) -> (i32, i32) {
    %c0_i32 = arith.constant 0 : i32
    %c0_i32_0 = arith.constant 0 : i32
    %c0_i32_1 = arith.constant 0 : i32
    return %c0_i32, %c0_i32_0 : i32, i32
  }
  func.func @transform_8(%arg0: i32, %arg1: i32) -> (i32, i32) {
    %c0_i32 = arith.constant 0 : i32
    %c0_i32_0 = arith.constant 0 : i32
    %c0_i32_1 = arith.constant 0 : i32
    return %c0_i32, %c0_i32_0 : i32, i32
  }
  func.func @transform_9(%arg0: i32, %arg1: i32) -> (i32, i32, i32) {
    %c0_i32 = arith.constant 0 : i32
    %c0_i32_0 = arith.constant 0 : i32
    return %arg0, %c0_i32, %arg1 : i32, i32, i32
  }
}

</mosaic_0001>

<bundles_post_ra>
// kernel: tpu_custom_call.1
= control target key start
LH: loop header
LB: loop body
LE: loop exit
PB: predicated region body
PF: predicated region fallthrough
CT: control target
= control target key end

     0   :  { %14 = vsyncpa [#allocation3], 0  ;;  %s2810_s0 = inlined_call_operand.vmem [shape: f32[2,4,256], index: 0, kind: input, shape index: {}]   ;;  %s2811_s1 = inlined_call_operand.vmem [shape: f32[2,2,2,4,16], index: 1, kind: input, shape index: {}]   ;;  %s2812_s2 = inlined_call_operand.vmem [shape: f32[4,128], index: 2, kind: input, shape index: {}]   ;;  %s2813_s3 = inlined_call_operand.vmem [shape: f32[32,4], index: 3, kind: input, shape index: {}]   ;;  %s2814_s4 = inlined_call_operand.vmem [shape: f32[32,1], index: 4, kind: input, shape index: {}]   ;;  %s2815_s5 = inlined_call_operand.vmem [shape: f32[32,9], index: 5, kind: input, shape index: {}]   ;;  %s2816_s6 = inlined_call_operand.vmem [shape: f32[32,1], index: 6, kind: input, shape index: {}]   ;;  %s2817_s7 = inlined_call_operand.vmem [shape: f32[32,32], index: 7, kind: input, shape index: {}]   ;;  %s2818_s8 = inlined_call_operand.vmem [shape: f32[32,1], index: 8, kind: input, shape index: {}]   ;;  %s2819_s9 = inlined_call_operand.hbm [shape: f32[2,32,256], index: 9, kind: output, shape index: {}]  }
   0x1   :  { %16 = vsyncpa [#allocation3 + $0x1], 0  ;;  %s2002_s30 = smov 0   ;;  %s2004_s10 = smov 0  }
   0x2   :  { %s2006_s11 = smov 0   ;;  %s2008_s12 = smov 0  }
   0x3   :  { %s2010_s13 = smov 0   ;;  %s2012_s14 = smov 0  }
   0x4   :  { %s2014_s15 = smov 0   ;;  %s2016_s16 = smov 0  }
   0x5 LB: > { %2829 = sst [smem:[#allocation5_spill]] %s1900_s30  ;;  %s1615_s17 = sadd.s32 4294967295, %s1928_s16   ;;  %s1928_s16 = sphi %s2016_s16, %s22_s16   ;;  %s1924_s15 = sphi %s2014_s15, %s2857_s15   ;;  %s1920_s14 = sphi %s2012_s14, %s2856_s14   ;;  %s1916_s13 = sphi %s2010_s13, %s2855_s13   ;;  %s1912_s12 = sphi %s2008_s12, %s2854_s12   ;;  %s1908_s11 = sphi %s2006_s11, %s2853_s11   ;;  %s1904_s10 = sphi %s2004_s10, %s2859_s10   ;;  %s1900_s30 = sphi %s2002_s30, %s2858_s30  }
   0x6   : > { %2830 = sst [smem:[#allocation6_spill]] %s1908_s11  ;;  %s1616_s18 = sadd.s32 4294967294, %s1928_s16  }
   0x7   : > { %2831 = sst [smem:[#allocation7_spill]] %s1920_s14  ;;  %s31_s19 = sadd.s32 1, %s1920_s14 }
   0x8   : > { %2832 = sst [smem:[#allocation8_spill]] %s1924_s15  ;;  %p32_p0 = scmp.ge.s32.totalorder %s31_s19, 2 }
   0x9   : > { %s34_s20 = sadd.s32 1, %s1924_s15  ;;  %p256_p1 = scmp.ne.s32.totalorder %s1908_s11, %s1904_s10 }
   0xa   : > { %p257_p2 = scmp.eq.s32.totalorder %s1615_s17, 3  ;;  %s2861_s19 = smov (%p32_p0, %s31_s19), 0 }
   0xb   : > { %2833 = sst [smem:[#allocation9_spill]] %s2861_s19  ;;  %s2863_s20 = smov (!%p32_p0, %s34_s20), %s1924_s15 }
   0xc   : > { %s242_s21 = ssub.s32 %s1920_s14, %s2861_s19  ;;  %p2053_p3 = por %p257_p2, %p256_p1 }
   0xd   : > { %p36_p4 = scmp.ge.s32.totalorder %s2863_s20, 2  ;;  %p262_p5 = scmp.ne.s32.totalorder %s1904_s10, %s1900_s30 }
   0xe   : > { %p263_p6 = scmp.eq.s32.totalorder %s1616_s18, 3  ;;  %p1619_p7 = scmp.ge.s32.totalorder %s1928_s16, 1 }
   0xf   : > { %s2865_s20 = smov (%p36_p4, %s2863_s20), 0  ;;  %p325_p9 = scmp.lt.s32.totalorder %s1928_s16, 5 }
  0x10   : > { %2835 = sst [smem:[#allocation10_spill]] %s2865_s20  ;;  %p2062_p8 = por %p263_p6, %p262_p5 }
  0x11   : > { %s241_s24 = ssub.s32 %s1924_s15, %s2865_s20  ;;  %s246_s25 = sadd.s32 1, %s1908_s11 }
  0x12   : > { %s2836_s23 = scalar_select %p2062_p8, 1, 0 }
  0x13   : > { %s243_s26 = sor.u32 %s242_s21, %s241_s24  ;;  %p326_p10 = pnand %p1619_p7, %p325_p9 }
  0x14   : > { %2837 = sst [smem:[#allocation11_spill]] %s2836_s23  ;;  %p244_p11 = scmp.eq.s32.totalorder %s243_s26, 0 }
  0x15   : > { %329 = sbr.rel (%p326_p10) target bundleno = 863 (0x35f), region = 56 }
  0x16   : > { %s2071_s27 = scalar_select %p244_p11, %s1908_s11, %s246_s25  }
  0x18   : > { %2838 = sst [smem:[#allocation12_spill]] %s2071_s27 }
  0x1a   : > { %p373_p12 = scmp.lt.s32.totalorder %s1916_s13, 1  ;;  %p375_p13 = scmp.lt.s32.totalorder %s1912_s12, 1  ;;  %v390_v0 = vld [vmem:[%s2813_s3] sm:$0xff]  ;;  %vm419_vm0 = vcmask 31744   ;;  %v396_v1 = vld [vmem:[%s2814_s4 + $0x8] sm:$0xff]  ;;  %v2827_v2 = vmov 0  }
  0x1b   : > { %1678 = vmatprep.mubr.msk.f32.mxu0 %vm419_vm0, %v390_v0  ;;  %1686 = vmatprep.mubr.msk.f32.mxu1 %vm419_vm0, %v390_v0  ;;  %v398_v3 = vld [vmem:[%s2814_s4 + $0x18] sm:$0xff]  ;;  %v395_v4 = vld [vmem:[%s2814_s4] sm:$0xff]  ;;  %v397_v5 = vld [vmem:[%s2814_s4 + $0x10] sm:$0xff]  ;;  %vm432_vm1 = vcmask 1043456   ;;  %v1931_v13 = vmov 1   ;;  %v1932_v16 = vmov 3  }
  0x1c   : > { %s374_s21 = scalar_select %p373_p12, %s1916_s13, 1  ;;  %1807 = vset.pattern.permute.xlu1 %v2827_v2  ;;  %1806 = vset.pattern.permute.xlu0 %v2827_v2  ;;  %v391_v7 = vld [vmem:[%s2813_s3 + $0x8] sm:$0xff]  ;;  %v392_v8 = vld [vmem:[%s2813_s3 + $0x10] sm:$0xff]  ;;  %v393_v11 = vld [vmem:[%s2813_s3 + $0x18] sm:$0xff]  ;;  %v1933_v17 = vmov 2   ;;  %v1934_v19 = vmov 4  }
  0x1d   : > { %s376_s24 = scalar_select %p375_p13, %s1912_s12, 1  ;;  %406 = vperm.xlu1 %1807, %v396_v1   ;;  %416 = vperm.xlu0 %1806, %v398_v3   ;;  %v2122_v12 = vld [vmem:[%s2815_s5 + $0x18] sm:$0xff]  ;;  %v2133_v14 = vld [vmem:[%s2815_s5 + $0x10] sm:$0xff]  ;;  %v2140_v15 = vld [vmem:[%s2815_s5 + $0x8] sm:$0xff]  ;;  %v1935_v20 = vmov 5   ;;  %v1936_v21 = vmov 6  }
  0x1e   : > { %s1621_s28 = sshll.u32 %s374_s21, 1  ;;  %s1624_s29 = sshll.u32 %s374_s21, 2  ;;  %v2155_v18 = vld [vmem:[%s2815_s5] sm:$0xff]  ;;  %v1937_v22 = vmov 7   ;;  %vm837_vm2 = vcmask 130048   ;;  %vm842_vm3 = vcmask 261120  }
  0x1f   : > { %s378_s17 = sadd.s32 %s1621_s28, %s376_s24  ;;  %s1623_s18 = sshll.u32 %s376_s24, 1  ;;  %vm847_vm4 = vcmask 392192   ;;  %vm852_vm5 = vcmask 523264   ;;  %vm857_vm6 = vcmask 654336   ;;  %vm862_vm7 = vcmask 785408  }
  0x20   : > { %s1622_s27 = sshll.u32 %s378_s17, 2  ;;  %s387_s11 = sadd.s32 %s1624_s29, %s1623_s18  ;;  %vm867_vm8 = vcmask 916480  }
  0x21   : > { %s380_s25 = scalar_lea.vmem %s2810_s0, %s1622_s27  ;;  %s1625_s26 = sshll.u32 %s387_s11, 2  ;;  %401 = vperm.xlu1 %1807, %v395_v4   ;;  %411 = vperm.xlu0 %1806, %v397_v5  }
  0x22   : > { %v394_v6 = vld [vmem:[%s380_s25] sm:$0xf]  ;;  %s389_s15 = scalar_lea.vmem %s2811_s1, %s1625_s26  ;;  %p525_p0 = scmp.gt.s32.totalorder %s1912_s12, 0 }
  0x23   : > { %1676 = vmatprep.subr.msk.mxu0 %vm432_vm1, %v394_v6  ;;  %v531_v9 = vld [vmem:[%s389_s15] sm:$0xf]  ;;  %v1636_v10 = vld [vmem:[%s389_s15 + $0x4] sm:$0xf]  ;;  %s1938_s14 = smov 112   ;;  %s1939_s15 = smov 16  }
  0x24   : > { %1677 = vmatpush3.msk.msra.mxu0 %vm432_vm1, %v394_v6  ;;  %1684 = vmatprep.subr.msk.mxu1 %vm432_vm1, %v531_v9  ;;  %s526_s19 = scalar_select %p525_p0, 1, 0 }
  0x25   : > { %1679 = vmatmul.mubr.msk.f32.vlgmr.msra.gmra.mxu0 %vm419_vm0, %v391_v7  ;;  %1685 = vmatpush3.msk.msra.mxu1 %vm432_vm1, %v531_v9  ;;  %s1940_s24 = smov 1   ;;  %s1941_s28 = smov 64  }
  0x26   : > { %1681 = vmatprep.mubr.msk.f32.mxu0 %vm419_vm0, %v392_v8  ;;  %1687 = vmatmul.mubr.msk.f32.vlgmr.msra.gmra.mxu1 %vm419_vm0, %v391_v7  ;;  %s527_s20 = scvt.s32.f32 %s526_s19  ;;  %s1942_s30 = smov 32  }
  0x27   : > { %1692 = vmatprep.subr.msk.mxu0 %vm432_vm1, %v1636_v10  ;;  %1808 = vset.pattern.permute.xlu1 %v1931_v13  ;;  %s1943_s11 = smov 48   ;;  %s1944_s23 = smov 80  }
  0x28   : > { %1693 = vmatpush3.msk.msra.mxu0 %vm432_vm1, %v1636_v10  ;;  %1090 = vperm.xlu1 %1808, %v2122_v12   ;;  %v2181_v29 = vstv %s527_s20  ;;  %s1945_s27 = smov 96   ;;  %s1946_s29 = smov 127  }
  0x29   : > { %1682 = vmatmul.mubr.msk.f32.gmra.mxu0 %vm419_vm0, %v393_v11  ;;  %1689 = vmatprep.mubr.msk.f32.mxu1 %vm419_vm0, %v392_v8  ;;  %s529_s17 = scalar_select %p375_p13, 1, 0 }
  0x2a   : > { %1694 = vmatprep.mubr.msk.f32.mxu0 %vm419_vm0, %v390_v0  ;;  %1690 = vmatmul.mubr.msk.f32.gmra.mxu1 %vm419_vm0, %v393_v11  ;;  %s1649_s21 = sshll.u32 %s1916_s13, 3 }
  0x2b   : > { %1810 = vset.pattern.permute.xlu0 %v1931_v13  ;;  %s530_s18 = scvt.s32.f32 %s529_s17  ;;  %s1510_s19 = sadd.s32 %s1912_s12, %s1649_s21 }
  0x2c   : > { %1082 = vperm.xlu0 %1810, %v2140_v15   ;;  %1086 = vperm.xlu1 %1808, %v2133_v14  }
  0x2d   : > { %1695 = vmatmul.mubr.msk.f32.vlgmr.msra.gmra.mxu0 %vm419_vm0, %v391_v7  ;;  %v723_v7 = vstv %s530_s18 }
  0x2e   : > { %1697 = vmatprep.mubr.msk.f32.mxu0 %vm419_vm0, %v392_v8 }
  0x30   : > { %1815 = vset.pattern.permute.xlu0 %v1932_v16  ;;  %1809 = vset.pattern.permute.xlu1 %v2827_v2 }
  0x31   : > { %1698 = vmatmul.mubr.msk.f32.gmra.mxu0 %vm419_vm0, %v393_v11  ;;  %1056 = vperm.xlu1 %1809, %v2140_v15  }
  0x32   : > { %1162 = vperm.xlu0 %1815, %v2133_v14  }
  0x35   : > { %1811 = vset.pattern.permute.xlu1 %v1933_v17 }
  0x36   : > { %1816 = vset.pattern.permute.xlu0 %v1933_v17  ;;  %1126 = vperm.xlu1 %1811, %v2133_v14  }
  0x37   : > { %1130 = vperm.xlu0 %1816, %v2122_v12  }
  0x3a   : > { %1812 = vset.pattern.permute.xlu1 %v1932_v16 }
  0x3b   : > { %1118 = vperm.xlu0 %1816, %v2155_v18   ;;  %1166 = vperm.xlu1 %1812, %v2122_v12  }
  0x3f   : > { %1821 = vset.pattern.permute.xlu0 %v1934_v19  ;;  %1813 = vset.pattern.permute.xlu1 %v1931_v13 }
  0x40   : > { %1182 = vperm.xlu0 %1821, %v2140_v15   ;;  %1078 = vperm.xlu1 %1813, %v2155_v18  }
  0x44   : > { %1822 = vset.pattern.permute.xlu0 %v1935_v20  ;;  %1814 = vset.pattern.permute.xlu1 %v1933_v17 }
  0x45   : > { %1226 = vperm.xlu0 %1822, %v2122_v12   ;;  %1122 = vperm.xlu1 %1814, %v2140_v15  }
  0x49   : > { %1218 = vperm.xlu0 %1822, %v2140_v15   ;;  %1817 = vset.pattern.permute.xlu1 %v1934_v19 }
  0x4a   : > { %1190 = vperm.xlu1 %1817, %v2122_v12  }
  0x4d   : > { %1829 = vset.pattern.permute.xlu0 %v1936_v21 }
  0x4e   : > { %1818 = vset.pattern.permute.xlu1 %v1932_v16 }
  0x4f   : > { %1158 = vperm.xlu1 %1818, %v2140_v15  }
  0x53   : > { %1819 = vset.pattern.permute.xlu1 %v1934_v19 }
  0x54   : > { %1186 = vperm.xlu1 %1819, %v2133_v14  }
  0x58   : > { %1820 = vset.pattern.permute.xlu1 %v1932_v16 }
  0x59   : > { %1154 = vperm.xlu1 %1820, %v2155_v18  }
  0x5d   : > { %1823 = vset.pattern.permute.xlu1 %v1935_v20 }
  0x5e   : > { %1222 = vperm.xlu1 %1823, %v2133_v14  }
  0x62   : > { %1824 = vset.pattern.permute.xlu1 %v1936_v21 }
  0x63   : > { %1262 = vperm.xlu1 %1824, %v2122_v12  }
  0x67   : > { %1825 = vset.pattern.permute.xlu1 %v1934_v19 }
  0x68   : > { %1178 = vperm.xlu1 %1825, %v2155_v18  }
  0x6c   : > { %1826 = vset.pattern.permute.xlu1 %v1936_v21 }
  0x6d   : > { %1258 = vperm.xlu1 %1826, %v2133_v14  }
  0x71   : > { %1827 = vset.pattern.permute.xlu1 %v1937_v22 }
  0x72   : > { %1286 = vperm.xlu1 %1827, %v2122_v12  }
  0x76   : > { %1828 = vset.pattern.permute.xlu1 %v1935_v20 }
  0x98   : > { %v2175_v23 = vpop.permute.xlu1 %406  ;;  %v2204_v39 = vpop.permute.xlu0 %416 }
  0x9c   : > { %v2194_v34 = vpop.permute.xlu1 %401  ;;  %v2272_v55 = vpop.permute.xlu0 %411 }
  0xa3   : > { %v2220_v44 = vpop.permute.xlu1 %1090 }
  0xa7   : > { %v2230_v45 = vpop.permute.xlu1 %1086  ;;  %v2310_v4 = vpop.permute.xlu0 %1082 }
  0xac   : > { %v2236_v46 = vpop.permute.xlu1 %1056 }
  0xad   : > { %v2320_v10 = vpop.permute.xlu0 %1162 }
  0xb1   : > { %v2247_v49 = vpop.permute.xlu1 %1126 }
  0xb2   : > { %v2333_v16 = vpop.permute.xlu0 %1130 }
  0xb6   : > { %v2256_v52 = vpop.permute.xlu1 %1166  ;;  %v2343_v21 = vpop.permute.xlu0 %1118 }
  0xbb   : > { %v2266_v53 = vpop.permute.xlu1 %1078 }
  0xc0   : > { %v2276_v59 = vpop.permute.xlu1 %1122 }
  0xc5   : > { %v2288_v62 = vpop.permute.xlu1 %1190 }
  0xca   : > { %v2299_v1 = vpop.permute.xlu1 %1158 }
  0xcf   : > { %v2312_v5 = vpop.permute.xlu1 %1186 }
  0xd4   : > { %v2322_v11 = vpop.permute.xlu1 %1154 }
  0xd9   : > { %v2335_v17 = vpop.permute.xlu1 %1222 }
  0xda   : > { %2839 = vst [vmem:[#allocation13_spill] sm:$0xff] %v2335_v17 }
  0xe5   : > { %v1680_v24 = vpop.f32.mrf.mxu0 }
  0xe6   : > { %v508_v25 = vadd.f32 %v1680_v24, %v2175_v23  ;;  %v1688_v26 = vpop.f32.mrf.mxu1 }
  0xe7   : > { %v607_v28 = vadd.f32 %v1688_v26, %v2175_v23  ;;  %v502_v32 = vpop.f32.mrf.mxu0 }
  0xe8   : > { %v2178_v27 = vmax.f32 %v508_v25, 0.0  ;;  %v601_v33 = vpop.f32.mrf.mxu1  ;;  %v503_v35 = vadd.f32 %v502_v32, %v2194_v34  ;;  %v2355_v25 = vpop.permute.xlu0 %1182 }
  0xe9   : > { %v621_v30 = vmax.f32 %v607_v28, 0.0  ;;  %v602_v36 = vadd.f32 %v601_v33, %v2194_v34  ;;  %v1683_v40 = vpop.f32.mrf.mxu0 }
  0xea   : > { %886 = vrot.lane.b32.xlu0 %v2178_v27, %s1938_s14  ;;  %734 = vrot.lane.b32.xlu1 %v2178_v27, %s1939_s15  ;;  %v2202_v37 = vmax.f32 %v503_v35, 0.0  ;;  %v518_v41 = vadd.f32 %v1683_v40, %v2204_v39  ;;  %v1691_v47 = vpop.f32.mrf.mxu1 }
  0xeb   : > { %v2188_v31 = vmul.f32 %v2181_v29, %v621_v30  ;;  %v620_v38 = vmax.f32 %v602_v36, 0.0  ;;  %v617_v48 = vadd.f32 %v1691_v47, %v2204_v39  ;;  %v512_v56 = vpop.f32.mrf.mxu0 }
  0xec   : > { %v2214_v43 = vmax.f32 %v518_v41, 0.0  ;;  %v611_v54 = vpop.f32.mrf.mxu1  ;;  %v513_v57 = vadd.f32 %v512_v56, %v2272_v55  ;;  %v2364_v30 = vpop.permute.xlu0 %1226 }
  0xed   : > { %v2212_v42 = vmul.f32 %v2181_v29, %v620_v38  ;;  %v623_v50 = vmax.f32 %v617_v48, 0.0  ;;  %v612_v58 = vadd.f32 %v611_v54, %v2272_v55  ;;  %v1696_v0 = vpop.f32.mrf.mxu0 }
  0xee   : > { %755 = vrot.lane.b32.xlu0 %v2188_v31, %s1939_s15  ;;  %1143 = vrot.lane.b32.xlu1 %v2178_v27, %s1940_s24  ;;  %v2282_v60 = vmax.f32 %v513_v57, 0.0  ;;  %v706_v3 = vadd.f32 %v1696_v0, %v2175_v23  ;;  %v2345_v23 = vpop.permute.xlu1 %1262 }
  0xef   : > { %v2254_v51 = vmul.f32 %v2181_v29, %v623_v50  ;;  %v622_v61 = vmax.f32 %v612_v58, 0.0  ;;  %v700_v9 = vpop.f32.mrf.mxu0  ;;  %2840 = vst [vmem:[#allocation14_spill] sm:$0xff] %v2345_v23 }
  0xf0   : > { %v720_v6 = vmax.f32 %v706_v3, 0.0  ;;  %v701_v13 = vadd.f32 %v700_v9, %v2194_v34  ;;  %v2378_v34 = vpop.permute.xlu0 %1218 }
  0xf1   : > { %v2291_v63 = vmul.f32 %v2181_v29, %v622_v61  ;;  %v1699_v24 = vpop.f32.mrf.mxu0 }
  0xf2   : > { %791 = vrot.lane.b32.xlu0 %v2188_v31, %s1941_s28  ;;  %767 = vrot.lane.b32.xlu1 %v2188_v31, %s1942_s30  ;;  %v2318_v8 = vmul.f32 %v723_v7, %v720_v6  ;;  %v719_v19 = vmax.f32 %v701_v13, 0.0  ;;  %v2357_v26 = vpop.permute.xlu1 %1178  ;;  %v716_v28 = vadd.f32 %v1699_v24, %v2204_v39 }
  0xf3   : > { %v710_v36 = vpop.f32.mrf.mxu0 }
  0xf4   : > { %v2341_v20 = vmul.f32 %v723_v7, %v719_v19  ;;  %v722_v29 = vmax.f32 %v716_v28, 0.0  ;;  %v711_v38 = vadd.f32 %v710_v36, %v2272_v55  ;;  %v1947_v28 = vmov 8  }
  0xf6   : > { %779 = vrot.lane.b32.xlu1 %v2188_v31, %s1943_s11  ;;  %1141 = vrot.lane.b32.xlu0 %v2202_v37, %s1940_s24  ;;  %v2366_v32 = vpop.permute.xlu1 %1258  ;;  %v2372_v33 = vmul.f32 %v723_v7, %v722_v29  ;;  %v721_v41 = vmax.f32 %v711_v38, 0.0 }
  0xf7   : > { %2841 = vst [vmem:[#allocation15_spill] sm:$0xff] %v2366_v32 }
  0xf8   : > { %v2401_v50 = vmul.f32 %v723_v7, %v721_v41 }
  0xfa   : > { %803 = vrot.lane.b32.xlu1 %v2188_v31, %s1944_s23  ;;  %753 = vrot.lane.b32.xlu0 %v2212_v42, %s1939_s15  ;;  %v2380_v35 = vpop.permute.xlu1 %1286 }
  0xfb   : > { %2842 = vst [vmem:[#allocation16_spill] sm:$0xff] %v2380_v35  ;;  %v741_v35 = vlaneseq }
  0xfe   : > { %815 = vrot.lane.b32.xlu1 %v2188_v31, %s1945_s27  ;;  %738 = vrot.lane.b32.xlu0 %v2214_v43, %s1939_s15 }
 0x102   : > { %827 = vrot.lane.b32.xlu1 %v2188_v31, %s1938_s14  ;;  %777 = vrot.lane.b32.xlu0 %v2212_v42, %s1943_s11 }
 0x106   : > { %789 = vrot.lane.b32.xlu0 %v2212_v42, %s1941_s28  ;;  %732 = vrot.lane.b32.xlu1 %v2202_v37, %s1939_s15 }
 0x10a   : > { %801 = vrot.lane.b32.xlu0 %v2212_v42, %s1944_s23  ;;  %884 = vrot.lane.b32.xlu1 %v2202_v37, %s1938_s14 }
 0x10e   : > { %813 = vrot.lane.b32.xlu0 %v2212_v42, %s1945_s27  ;;  %765 = vrot.lane.b32.xlu1 %v2212_v42, %s1942_s30 }
 0x112   : > { %825 = vrot.lane.b32.xlu0 %v2212_v42, %s1938_s14  ;;  %1147 = vrot.lane.b32.xlu1 %v2214_v43, %s1940_s24 }
 0x116   : > { %890 = vrot.lane.b32.xlu0 %v2214_v43, %s1938_s14  ;;  %771 = vrot.lane.b32.xlu1 %v2254_v51, %s1942_s30 }
 0x11a   : > { %1207 = vrot.lane.b32.xlu0 %v2214_v43, %s1946_s29  ;;  %783 = vrot.lane.b32.xlu1 %v2254_v51, %s1943_s11 }
 0x11e   : > { %759 = vrot.lane.b32.xlu0 %v2254_v51, %s1939_s15  ;;  %795 = vrot.lane.b32.xlu1 %v2254_v51, %s1941_s28 }
 0x122   : > { %807 = vrot.lane.b32.xlu0 %v2254_v51, %s1944_s23  ;;  %819 = vrot.lane.b32.xlu1 %v2254_v51, %s1945_s27 }
 0x126   : > { %1145 = vrot.lane.b32.xlu0 %v2282_v60, %s1940_s24  ;;  %831 = vrot.lane.b32.xlu1 %v2254_v51, %s1938_s14 }
 0x12a   : > { %757 = vrot.lane.b32.xlu0 %v2291_v63, %s1939_s15  ;;  %736 = vrot.lane.b32.xlu1 %v2282_v60, %s1939_s15 }
 0x12e   : > { %769 = vrot.lane.b32.xlu0 %v2291_v63, %s1942_s30  ;;  %888 = vrot.lane.b32.xlu1 %v2282_v60, %s1938_s14 }
 0x132   : > { %793 = vrot.lane.b32.xlu0 %v2291_v63, %s1941_s28  ;;  %781 = vrot.lane.b32.xlu1 %v2291_v63, %s1943_s11 }
 0x136   : > { %805 = vrot.lane.b32.xlu0 %v2291_v63, %s1944_s23  ;;  %817 = vrot.lane.b32.xlu1 %v2291_v63, %s1945_s27 }
 0x13a   : > { %829 = vrot.lane.b32.xlu0 %v2291_v63, %s1938_s14  ;;  %919 = vrot.lane.b32.xlu1 %v2318_v8, %s1942_s30 }
 0x13e   : > { %907 = vrot.lane.b32.xlu0 %v2318_v8, %s1939_s15  ;;  %931 = vrot.lane.b32.xlu1 %v2318_v8, %s1943_s11 }
 0x142   : > { %943 = vrot.lane.b32.xlu0 %v2318_v8, %s1941_s28  ;;  %955 = vrot.lane.b32.xlu1 %v2318_v8, %s1944_s23 }
 0x146   : > { %905 = vrot.lane.b32.xlu0 %v2341_v20, %s1939_s15  ;;  %967 = vrot.lane.b32.xlu1 %v2318_v8, %s1945_s27 }
 0x14a   : > { %929 = vrot.lane.b32.xlu0 %v2341_v20, %s1943_s11  ;;  %979 = vrot.lane.b32.xlu1 %v2318_v8, %s1938_s14 }
 0x14e   : > { %941 = vrot.lane.b32.xlu0 %v2341_v20, %s1941_s28  ;;  %917 = vrot.lane.b32.xlu1 %v2341_v20, %s1942_s30 }
 0x152   : > { %953 = vrot.lane.b32.xlu0 %v2341_v20, %s1944_s23  ;;  %965 = vrot.lane.b32.xlu1 %v2341_v20, %s1945_s27 }
 0x156   : > { %977 = vrot.lane.b32.xlu0 %v2341_v20, %s1938_s14  ;;  %923 = vrot.lane.b32.xlu1 %v2372_v33, %s1942_s30 }
 0x15a   : > { %911 = vrot.lane.b32.xlu0 %v2372_v33, %s1939_s15  ;;  %947 = vrot.lane.b32.xlu1 %v2372_v33, %s1941_s28 }
 0x15c   : > { %v2387_v39 = vpop.permute.xlu0 %886  ;;  %v2389_v40 = vpop.permute.xlu1 %734 }
 0x15e   : > { %935 = vrot.lane.b32.xlu0 %v2372_v33, %s1943_s11  ;;  %971 = vrot.lane.b32.xlu1 %v2372_v33, %s1945_s27 }
 0x160   : > { %v756_v47 = vpop.permute.xlu0 %755  ;;  %v2395_v48 = vpop.permute.xlu1 %1143 }
 0x162   : > { %959 = vrot.lane.b32.xlu0 %v2372_v33, %s1944_s23  ;;  %983 = vrot.lane.b32.xlu1 %v2372_v33, %s1938_s14 }
 0x164   : > { %v2403_v54 = vpop.permute.xlu0 %791  ;;  %v768_v55 = vpop.permute.xlu1 %767 }
 0x166   : > { %921 = vrot.lane.b32.xlu0 %v2401_v50, %s1942_s30  ;;  %909 = vrot.lane.b32.xlu1 %v2401_v50, %s1939_s15  ;;  %s1650_s15 = sshll.u32 %s1510_s19, 7 }
 0x168   : > { %v780_v56 = vpop.permute.xlu1 %779  ;;  %v2409_v57 = vpop.permute.xlu0 %1141 }
 0x16a   : > { %945 = vrot.lane.b32.xlu0 %v2401_v50, %s1941_s28  ;;  %933 = vrot.lane.b32.xlu1 %v2401_v50, %s1943_s11  ;;  %s2757_s28 = scalar_lea.hbm %s2819_s9, %s1650_s15 }
 0x16c   : > { %v804_v58 = vpop.permute.xlu1 %803  ;;  %v754_v61 = vpop.permute.xlu0 %753 }
 0x16d   : > { %v838_v38 = vsel %vm837_vm2, %v2212_v42, %v754_v61  ;;  %v839_v61 = vsel %vm837_vm2, %v2188_v31, %v756_v47 }
 0x16e   : > { %957 = vrot.lane.b32.xlu0 %v2401_v50, %s1944_s23  ;;  %969 = vrot.lane.b32.xlu1 %v2401_v50, %s1945_s27  ;;  %s1948_s23 = smov [#allocation2]  }
 0x16f   : > { %s1840_s27 = sshll.u32 %s1948_s23, 4  ;;  %s1841_s27 = int_to_ptr.vmem [resolvable:$false] %s1840_s27 }
 0x170   : > { %v816_v0 = vpop.permute.xlu1 %815  ;;  %v2419_v3 = vpop.permute.xlu0 %738  ;;  %s1842_s17 = scalar_lea.vmem %s1841_s27, 1024 }
 0x172   : > { %1254 = vperm.xlu0 %1829, %v2140_v15   ;;  %1205 = vrot.lane.b32.xlu1 %v2282_v60, %s1946_s29 }
 0x174   : > { %v828_v6 = vpop.permute.xlu1 %827  ;;  %v778_v7 = vpop.permute.xlu0 %777 }
 0x176   : > { %981 = vrot.lane.b32.xlu0 %v2401_v50, %s1938_s14  ;;  %1214 = vperm.xlu1 %1828, %v2155_v18  }
 0x178   : > { %v790_v9 = vpop.permute.xlu0 %789  ;;  %v2427_v13 = vpop.permute.xlu1 %732 }
 0x17a   : > { %1203 = vrot.lane.b32.xlu0 %v2178_v27, %s1946_s29  ;;  %1830 = vset.pattern.permute.xlu1 %v1937_v22 }
 0x17b   : > { %1282 = vperm.xlu1 %1830, %v2133_v14  }
 0x17c   : > { %v802_v19 = vpop.permute.xlu0 %801  ;;  %v2433_v24 = vpop.permute.xlu1 %884 }
 0x17e   : > { %1250 = vperm.xlu0 %1829, %v2155_v18  }
 0x17f   : > { %1831 = vset.pattern.permute.xlu1 %v1947_v28 }
 0x180   : > { %v814_v29 = vpop.permute.xlu0 %813  ;;  %1322 = vperm.xlu1 %1831, %v2122_v12   ;;  %v766_v36 = vpop.permute.xlu1 %765 }
 0x181   : > { %v843_v41 = vsel %vm842_vm3, %v838_v38, %v766_v36  ;;  %v844_v36 = vsel %vm842_vm3, %v839_v61, %v768_v55  ;;  %v1336_v61 = vld [vmem:[%s2816_s6 + $0x18] sm:$0xff] }
 0x182   : > { %1833 = vset.pattern.permute.xlu0 %v1947_v28  ;;  %v848_v23 = vsel %vm847_vm4, %v843_v41, %v778_v7  ;;  %v728_v7 = vld [vmem:[%s2812_s2] sm:$0x1] }
 0x183   : > { %1318 = vperm.xlu0 %1833, %v2133_v14   ;;  %v853_v38 = vsel %vm852_vm5, %v848_v23, %v790_v9  ;;  %v740_v23 = vsub.f32 1.0, %v728_v7  ;;  %v2843_v9 = vmov 0  }
 0x184   : > { %v826_v2 = vpop.permute.xlu0 %825  ;;  %1832 = vset.pattern.permute.xlu1 %v1937_v22  ;;  %v2442_v32 = vpop.permute.xlu1 %1147  ;;  %v742_v22 = vshrl.u32 %v741_v35, 7  ;;  %v858_v47 = vsel %vm857_vm6, %v853_v38, %v802_v19 }
 0x185   : > { %1278 = vperm.xlu1 %1832, %v2140_v15  }
 0x186   : > { %v2464_v35 = vsub.s32 0, %v742_v22  ;;  %v863_v22 = vsel %vm862_vm7, %v858_v47, %v814_v29 }
 0x187   : > { %1314 = vperm.xlu0 %1833, %v2140_v15   ;;  %v849_v15 = vsel %vm847_vm4, %v844_v36, %v780_v56 }
 0x188   : > { %v2447_v28 = vpop.permute.xlu0 %890  ;;  %v772_v42 = vpop.permute.xlu1 %771  ;;  %v854_v55 = vsel %vm852_vm5, %v849_v15, %v2403_v54  ;;  %v875_v19 = vrot.slane %v728_v7, %v2464_v35  ;;  %v744_v15 = vrot.slane %v740_v23, %v2464_v35 }
 0x189   : > { %1201 = vrot.lane.b32.xlu1 %v2202_v37, %s1946_s29  ;;  %v859_v56 = vsel %vm857_vm6, %v854_v55, %v804_v58 }
 0x18a   : > { %v864_v36 = vsel %vm862_vm7, %v859_v56, %v816_v0  ;;  %v868_v0 = vsel %vm867_vm8, %v863_v22, %v826_v2  ;;  %v746_v47 = vmul.f32 %v744_v15, %v2389_v40  ;;  %v745_v2 = vmul.f32 %v744_v15, %v2427_v13 }
 0x18b   : > { %1310 = vperm.xlu0 %1833, %v2155_v18   ;;  %v869_v54 = vsel %vm867_vm8, %v864_v36, %v828_v6  ;;  %v876_v56 = vmul.f32 %v875_v19, %v868_v0 }
 0x18c   : > { %v2460_v41 = vpop.permute.xlu0 %1207  ;;  %v784_v31 = vpop.permute.xlu1 %783  ;;  %v877_v7 = vmul.f32 %v875_v19, %v869_v54  ;;  %v748_v54 = vmul.f32 %v744_v15, %v2419_v3 }
 0x18d   : > { %1274 = vperm.xlu1 %1832, %v2155_v18  }
 0x18f   : > { %1835 = vset.pattern.permute.xlu0 %v2843_v9 }
 0x190   : > { %1066 = vperm.xlu0 %1835, %v2122_v12   ;;  %v760_v38 = vpop.permute.xlu0 %759  ;;  %v796_v17 = vpop.permute.xlu1 %795  ;;  %v1335_v12 = vld [vmem:[%s2816_s6 + $0x10] sm:$0xff] }
 0x191   : > { %v841_v58 = vsel %vm837_vm2, %v2254_v51, %v760_v38  ;;  %1834 = vset.pattern.permute.xlu1 %v2843_v9 }
 0x192   : > { %v846_v55 = vsel %vm842_vm3, %v841_v58, %v772_v42  ;;  %1354 = vperm.xlu1 %1834, %v1336_v61   ;;  %v2491_v42 = vadd.f32 %v877_v7, %v746_v47 }
 0x193   : > { %v851_v29 = vsel %vm847_vm4, %v846_v55, %v784_v31 }
 0x194   : > { %1061 = vperm.xlu0 %1835, %v2133_v14   ;;  %v808_v6 = vpop.permute.xlu0 %807  ;;  %v820_v51 = vpop.permute.xlu1 %819  ;;  %v856_v23 = vsel %vm852_vm5, %v851_v29, %v796_v17  ;;  %v2498_v14 = vadd.f32 %v876_v56, %v745_v2 }
 0x195   : > { %v861_v61 = vsel %vm857_vm6, %v856_v23, %v808_v6 }
 0x196   : > { %1349 = vperm.xlu1 %1834, %v1335_v12   ;;  %v866_v40 = vsel %vm862_vm7, %v861_v61, %v820_v51 }
 0x198   : > { %1051 = vperm.xlu0 %1835, %v2155_v18   ;;  %v2495_v31 = vpop.permute.xlu0 %1145  ;;  %v832_v9 = vpop.permute.xlu1 %831 }
 0x199   : > { %v871_v13 = vsel %vm867_vm8, %v866_v40, %v832_v9 }
 0x19a   : > { %1035 = vrot.lane.b32.xlu1 %v2491_v42, %s1940_s24  ;;  %v879_v18 = vmul.f32 %v875_v19, %v871_v13 }
 0x19c   : > { %v758_v17 = vpop.permute.xlu0 %757  ;;  %1101 = vrot.lane.b32.xlu0 %v2498_v14, %s1946_s29  ;;  %v737_v36 = vpop.permute.xlu1 %736  ;;  %v2515_v55 = vadd.f32 %v879_v18, %v748_v54  ;;  %v729_v54 = vld [vmem:[%s2812_s2 + $0x1] sm:$0x1] }
 0x19d   : > { %v840_v58 = vsel %vm837_vm2, %v2291_v63, %v758_v17  ;;  %v747_v9 = vmul.f32 %v744_v15, %v737_v36  ;;  %v892_v15 = vsub.f32 1.0, %v729_v54 }
 0x19e   : > { %1103 = vrot.lane.b32.xlu1 %v2491_v42, %s1946_s29 }
 0x1a0   : > { %v770_v22 = vpop.permute.xlu0 %769  ;;  %v2508_v38 = vpop.permute.xlu1 %888 }
 0x1a1   : > { %v845_v0 = vsel %vm842_vm3, %v840_v58, %v770_v22 }
 0x1a2   : > { %1033 = vrot.lane.b32.xlu1 %v2498_v14, %s1940_s24 }
 0x1a4   : > { %v794_v29 = vpop.permute.xlu0 %793  ;;  %v782_v12 = vpop.permute.xlu1 %781 }
 0x1a5   : > { %v850_v7 = vsel %vm847_vm4, %v845_v0, %v782_v12  ;;  %v2542_v12 = vrot.slane %v892_v15, %v2464_v35 }
 0x1a6   : > { %1039 = vrot.lane.b32.xlu1 %v2515_v55, %s1940_s24  ;;  %v855_v3 = vsel %vm852_vm5, %v850_v7, %v794_v29  ;;  %v2545_v7 = vrot.slane %v729_v54, %v2464_v35 }
 0x1a7   : > { %v897_v15 = vmul.f32 %v2542_v12, %v2433_v24 }
 0x1a8   : > { %v806_v6 = vpop.permute.xlu0 %805  ;;  %v818_v51 = vpop.permute.xlu1 %817 }
 0x1a9   : > { %v860_v47 = vsel %vm857_vm6, %v855_v3, %v806_v6 }
 0x1aa   : > { %1107 = vrot.lane.b32.xlu1 %v2515_v55, %s1946_s29  ;;  %v865_v63 = vsel %vm862_vm7, %v860_v47, %v818_v51 }
 0x1ac   : > { %v830_v56 = vpop.permute.xlu0 %829  ;;  %v920_v23 = vpop.permute.xlu1 %919 }
 0x1ad   : > { %v870_v2 = vsel %vm867_vm8, %v865_v63, %v830_v56  ;;  %v898_v56 = vmul.f32 %v2542_v12, %v2387_v39 }
 0x1ae   : > { %v878_v61 = vmul.f32 %v875_v19, %v870_v2 }
 0x1b0   : > { %v2527_v40 = vadd.f32 %v878_v61, %v747_v9  ;;  %v908_v17 = vpop.permute.xlu0 %907  ;;  %v932_v13 = vpop.permute.xlu1 %931 }
 0x1b1   : > { %v990_v18 = vsel %vm837_vm2, %v2318_v8, %v908_v17 }
 0x1b2   : > { %v994_v22 = vsel %vm842_vm3, %v990_v18, %v920_v23  ;;  %1037 = vrot.lane.b32.xlu0 %v2527_v40, %s1940_s24 }
 0x1b3   : > { %v998_v19 = vsel %vm847_vm4, %v994_v22, %v932_v13 }
 0x1b4   : > { %v944_v58 = vpop.permute.xlu0 %943  ;;  %v956_v0 = vpop.permute.xlu1 %955 }
 0x1b5   : > { %v1002_v36 = vsel %vm852_vm5, %v998_v19, %v944_v58 }
 0x1b6   : > { %1105 = vrot.lane.b32.xlu0 %v2527_v40, %s1946_s29  ;;  %v1006_v6 = vsel %vm857_vm6, %v1002_v36, %v956_v0 }
 0x1b8   : > { %v906_v8 = vpop.permute.xlu0 %905  ;;  %v968_v29 = vpop.permute.xlu1 %967 }
 0x1b9   : > { %v1010_v3 = vsel %vm862_vm7, %v1006_v6, %v968_v29  ;;  %v989_v2 = vsel %vm837_vm2, %v2341_v20, %v906_v8 }
 0x1bc   : > { %v930_v51 = vpop.permute.xlu0 %929  ;;  %v980_v47 = vpop.permute.xlu1 %979 }
 0x1bd   : > { %v1014_v63 = vsel %vm867_vm8, %v1010_v3, %v980_v47 }
 0x1be   : > { %v1022_v23 = vmul.f32 %v2545_v7, %v1014_v63 }
 0x1c0   : > { %v2555_v9 = vadd.f32 %v1022_v23, %v898_v56  ;;  %v942_v35 = vpop.permute.xlu0 %941  ;;  %v918_v61 = vpop.permute.xlu1 %917 }
 0x1c1   : > { %v993_v17 = vsel %vm842_vm3, %v989_v2, %v918_v61 }
 0x1c2   : > { %v997_v13 = vsel %vm847_vm4, %v993_v17, %v930_v51  ;;  %1239 = vrot.lane.b32.xlu1 %v2555_v9, %s1940_s24 }
 0x1c3   : > { %v1001_v18 = vsel %vm852_vm5, %v997_v13, %v942_v35 }
 0x1c4   : > { %v954_v22 = vpop.permute.xlu0 %953  ;;  %v966_v39 = vpop.permute.xlu1 %965 }
 0x1c5   : > { %v1005_v54 = vsel %vm857_vm6, %v1001_v18, %v954_v22 }
 0x1c6   : > { %v1009_v58 = vsel %vm862_vm7, %v1005_v54, %v966_v39 }
 0x1c8   : > { %v978_v20 = vpop.permute.xlu0 %977  ;;  %v924_v0 = vpop.permute.xlu1 %923 }
 0x1c9   : > { %v1013_v19 = vsel %vm867_vm8, %v1009_v58, %v978_v20 }
 0x1ca   : > { %v1021_v36 = vmul.f32 %v2545_v7, %v1013_v19 }
 0x1cc   : > { %v2568_v8 = vadd.f32 %v1021_v36, %v897_v15  ;;  %v912_v29 = vpop.permute.xlu0 %911  ;;  %v948_v6 = vpop.permute.xlu1 %947  ;;  %v1369_v15 = vld [vmem:[%s2818_s8] sm:$0xff] }
 0x1cd   : > { %v992_v3 = vsel %vm837_vm2, %v2372_v33, %v912_v29  ;;  %v900_v33 = vmul.f32 %v2542_v12, %v2447_v28 }
 0x1ce   : > { %1237 = vrot.lane.b32.xlu0 %v2568_v8, %s1940_s24  ;;  %v996_v47 = vsel %vm842_vm3, %v992_v3, %v924_v0 }
 0x1d0   : > { %v936_v51 = vpop.permute.xlu0 %935  ;;  %v972_v63 = vpop.permute.xlu1 %971 }
 0x1d1   : > { %v1000_v56 = vsel %vm847_vm4, %v996_v47, %v936_v51 }
 0x1d2   : > { %v1004_v24 = vsel %vm852_vm5, %v1000_v56, %v948_v6 }
 0x1d4   : > { %v960_v23 = vpop.permute.xlu0 %959  ;;  %v984_v35 = vpop.permute.xlu1 %983 }
 0x1d5   : > { %v1008_v2 = vsel %vm857_vm6, %v1004_v24, %v960_v23  ;;  %v899_v24 = vmul.f32 %v2542_v12, %v2508_v38 }
 0x1d6   : > { %v1012_v61 = vsel %vm862_vm7, %v1008_v2, %v972_v63 }
 0x1d7   : > { %v1016_v17 = vsel %vm867_vm8, %v1012_v61, %v984_v35 }
 0x1d8   : > { %v1024_v13 = vmul.f32 %v2545_v7, %v1016_v17  ;;  %v910_v22 = vpop.permute.xlu1 %909  ;;  %v922_v39 = vpop.permute.xlu0 %921 }
 0x1d9   : > { %v991_v28 = vsel %vm837_vm2, %v2401_v50, %v910_v22  ;;  %v1372_v50 = vld [vmem:[%s2818_s8 + $0x18] sm:$0xff] }
 0x1da   : > { %v2583_v18 = vadd.f32 %v1024_v13, %v900_v33  ;;  %v995_v0 = vsel %vm842_vm3, %v991_v28, %v922_v39  ;;  %v1334_v39 = vld [vmem:[%s2816_s6 + $0x8] sm:$0xff]  ;;  %v2638_v28 = vld [vmem:[%s2812_s2 + $0x3] ss:$0 sm:$0xff] }
 0x1dc   : > { %1243 = vrot.lane.b32.xlu0 %v2583_v18, %s1940_s24  ;;  %v934_v54 = vpop.permute.xlu1 %933  ;;  %v946_v58 = vpop.permute.xlu0 %945 }
 0x1dd   : > { %v999_v36 = vsel %vm847_vm4, %v995_v0, %v934_v54  ;;  %v1370_v0 = vld [vmem:[%s2818_s8 + $0x8] sm:$0xff] }
 0x1de   : > { %v1003_v29 = vsel %vm852_vm5, %v999_v36, %v946_v58 }
 0x1e0   : > { %1303 = vrot.lane.b32.xlu0 %v2583_v18, %s1946_s29  ;;  %v970_v20 = vpop.permute.xlu1 %969  ;;  %v958_v19 = vpop.permute.xlu0 %957 }
 0x1e1   : > { %v1007_v51 = vsel %vm857_vm6, %v1003_v29, %v958_v19  ;;  %v1365_v19 = vld [vmem:[%s2817_s7] sm:$0xff] }
 0x1e2   : > { %v1011_v47 = vsel %vm862_vm7, %v1007_v51, %v970_v20  ;;  %1708 = vmatprep.mubr.msk.f32.mxu1 %vm842_vm3, %v1365_v19 }
 0x1e4   : > { %1299 = vrot.lane.b32.xlu0 %v2555_v9, %s1946_s29  ;;  %v2601_v6 = vpop.permute.xlu1 %1205 }
 0x1e8   : > { %1297 = vrot.lane.b32.xlu0 %v2568_v8, %s1946_s29 }
 0x1ec   : > { %1375 = vperm.xlu0 %1835, %v1369_v15  }
 0x1ed   : > { %v2603_v3 = vpop.permute.xlu0 %1254 }
 0x1f0   : > { %1390 = vperm.xlu0 %1835, %v1372_v50   ;;  %v1371_v50 = vld [vmem:[%s2818_s8 + $0x10] sm:$0xff] }
 0x1f1   : > { %v982_v63 = vpop.permute.xlu0 %981  ;;  %v1215_v56 = vpop.permute.xlu1 %1214 }
 0x1f2   : > { %v1015_v23 = vsel %vm867_vm8, %v1011_v47, %v982_v63 }
 0x1f3   : > { %v1023_v2 = vmul.f32 %v2545_v7, %v1015_v23  ;;  %v1333_v7 = vld [vmem:[%s2816_s6] sm:$0xff] }
 0x1f5   : > { %v1027_v35 = vadd.f32 %v1023_v2, %v899_v24  ;;  %v1204_v61 = vpop.permute.xlu0 %1203 }
 0x1f6   : > { %v1283_v17 = vpop.permute.xlu1 %1282 }
 0x1f7   : > { %v2614_v33 = vmul.f32 %v1283_v17, %v1027_v35  ;;  %1241 = vrot.lane.b32.xlu1 %v1027_v35, %s1940_s24  ;;  %s370_s24 = sand.u32 1, %s1904_s10  }
 0x1f8   : > { %s2759_s30 = scalar_lea.sflag [#allocation3], %s370_s24 }
 0x1f9   : > { %v2617_v13 = vpop.permute.xlu0 %1250 }
 0x1fb   : > { %1301 = vrot.lane.b32.xlu1 %v1027_v35, %s1946_s29  ;;  %v2620_v22 = vpop.permute.xlu1 %1322  ;;  %s1620_s29 = sshll.u32 %s370_s24, 5 }
 0x1fc   : > { %s372_s20 = scalar_lea.vmem [#allocation2], %s1620_s29 }
 0x1fd   : > { %s1513_s14 = sshll.u32 %s372_s20, 4  ;;  %s2752_s14 = int_to_ptr.vmem [resolvable:$true] %s1513_s14 }
 0x1fe   : > { %v2625_v38 = vpop.permute.xlu0 %1318  ;;  %s1836_s11 = scalar_lea.vmem %s2752_s14, 512  ;;  %p1843_p5 = scmp.lt.s32.totalorder %s2752_s14, %s1841_s27 }
 0x1ff   : > { %1344 = vperm.xlu1 %1834, %v1334_v39   ;;  %p1837_p1 = scmp.ne.s32.totalorder %s2752_s14, %s1836_s11  ;;  %p1844_p6 = scmp.lt.s32.totalorder %s1842_s17, %s1836_s11 }
 0x200   : > { %v1279_v12 = vpop.permute.xlu1 %1278 }
 0x201   : > { %v2631_v54 = vmul.f32 %v1279_v12, %v2555_v9  ;;  %p1838_p2 = pnand %p1837_p1, %p2053_p3  ;;  %p1845_p7 = por %p1844_p6, %p1843_p5 }
 0x202   : > { %v2633_v58 = vpop.permute.xlu0 %1314 }
 0x203   : > { %1339 = vperm.xlu1 %1834, %v1333_v7   ;;  %v1094_v7 = vmul.f32 %v2310_v4, %v2491_v42  ;;  %p1839_p4 = pneg %p1838_p2 }
 0x204   : > { %v1202_v20 = vpop.permute.xlu1 %1201 }
 0x205   : > { %v1209_v9 = vmul.f32 %v2638_v28, %v1202_v20  ;;  %p1846_p9 = pnand %p1845_p7, %p1839_p4 }
 0x206   : > { %v2648_v15 = vpop.permute.xlu0 %1310 }
 0x207   : > { %2844 = vst [vmem:[#allocation17_spill] sm:$0xff] %v2648_v15  ;;  %v1229_v36 = vmul.f32 %v1215_v56, %v1209_v9  ;;  %1380 = vperm.xlu1 %1834, %v1370_v0   ;;  %v2663_v56 = vld [vmem:[%s2812_s2 + $0x2] ss:$0 sm:$0xff] }
 0x208   : > { %v1275_v29 = vpop.permute.xlu1 %1274  ;;  %v1150_v12 = vmul.f32 %v2663_v56, %v2395_v48  ;;  %v1194_v48 = vmul.f32 %v2355_v25, %v2178_v27  ;;  %v1149_v4 = vmul.f32 %v2663_v56, %v2409_v57 }
 0x209   : > { %v2654_v51 = vmul.f32 %v1275_v29, %v2568_v8  ;;  %v1210_v29 = vmul.f32 %v2638_v28, %v1204_v61 }
 0x20b   : > { %v1067_v47 = vpop.permute.xlu0 %1066  ;;  %1385 = vperm.xlu1 %1834, %v1371_v50   ;;  %v1230_v61 = vmul.f32 %v2378_v34, %v1210_v29  ;;  %v1152_v34 = vmul.f32 %v2663_v56, %v2442_v32 }
 0x20d   : > { %v2656_v63 = vpop.permute.xlu1 %1354 }
 0x20f   : > { %v1062_v23 = vpop.permute.xlu0 %1061 }
 0x211   : > { %v2658_v24 = vpop.permute.xlu1 %1349 }
 0x213   : > { %v1052_v2 = vpop.permute.xlu0 %1051 }
 0x215   : > { %v1036_v35 = vpop.permute.xlu1 %1035 }
 0x216   : > { %v1046_v17 = vmul.f32 %v2663_v56, %v1036_v35  ;;  %v1170_v35 = vmul.f32 %v2299_v1, %v1150_v12 }
 0x217   : > { %v1102_v0 = vpop.permute.xlu0 %1101 }
 0x218   : > { %v1070_v39 = vmul.f32 %v2236_v46, %v1046_v17  ;;  %v1113_v46 = vmul.f32 %v2638_v28, %v1102_v0  ;;  %v1169_v0 = vmul.f32 %v2322_v11, %v1149_v4  ;;  %v1196_v4 = vmul.f32 %v2288_v62, %v2214_v43 }
 0x219   : > { %v1104_v8 = vpop.permute.xlu1 %1103 }
 0x21a   : > { %v1114_v20 = vmul.f32 %v2638_v28, %v1104_v8  ;;  %v1098_v19 = vadd.f32 %v1094_v7, %v1070_v39  ;;  %v1133_v1 = vmul.f32 %v2343_v21, %v1113_v46  ;;  %v1172_v46 = vmul.f32 %v2256_v52, %v1152_v34 }
 0x21c   : > { %v1134_v9 = vmul.f32 %v2276_v59, %v1114_v20  ;;  %v1093_v59 = vmul.f32 %v2266_v53, %v2498_v14 }
 0x21d   : > { %v1034_v50 = vpop.permute.xlu1 %1033 }
 0x21e   : > { %v1138_v17 = vadd.f32 %v1134_v9, %v1098_v19  ;;  %v1045_v15 = vmul.f32 %v2663_v56, %v1034_v50  ;;  %v1193_v9 = vmul.f32 %v2357_v26, %v2202_v37  ;;  %v1151_v37 = vmul.f32 %v2663_v56, %v2495_v31 }
 0x21f   : > { %v1095_v26 = vmul.f32 %v2230_v45, %v2527_v40  ;;  %v1211_v45 = vmul.f32 %v2638_v28, %v2601_v6 }
 0x220   : > { %v1174_v42 = vadd.f32 %v1170_v35, %v1138_v17  ;;  %v1069_v39 = vmul.f32 %v1052_v2, %v1045_v15  ;;  %v1096_v15 = vmul.f32 %v2220_v44, %v2515_v55  ;;  %v1212_v44 = vmul.f32 %v2638_v28, %v2460_v41 }
 0x221   : > { %v1040_v8 = vpop.permute.xlu1 %1039  ;;  %v1171_v31 = vmul.f32 %v2320_v10, %v1151_v37  ;;  %v1195_v41 = vmul.f32 %v2312_v5, %v2282_v60 }
 0x222   : > { %v1097_v12 = vadd.f32 %v1093_v59, %v1069_v39  ;;  %v1048_v7 = vmul.f32 %v2663_v56, %v1040_v8  ;;  %v1198_v20 = vadd.f32 %v1194_v48, %v1174_v42  ;;  %v1232_v52 = vmul.f32 %v2364_v30, %v1212_v44  ;;  %v2845_v39 = vld [vmem:[#allocation13_spill] sm:$0xff] }
 0x224   : > { %v1137_v27 = vadd.f32 %v1133_v1, %v1097_v12  ;;  %v1072_v25 = vmul.f32 %v1067_v47, %v1048_v7  ;;  %v1038_v19 = vpop.permute.xlu0 %1037  ;;  %v1234_v57 = vadd.f32 %v1230_v61, %v1198_v20 }
 0x225   : > { %v1047_v53 = vmul.f32 %v2663_v56, %v1038_v19  ;;  %v1108_v14 = vpop.permute.xlu1 %1107 }
 0x226   : > { %v1173_v21 = vadd.f32 %v1169_v0, %v1137_v27  ;;  %v1116_v2 = vmul.f32 %v2638_v28, %v1108_v14  ;;  %v1100_v29 = vadd.f32 %v1096_v15, %v1072_v25  ;;  %v2846_v27 = vld [vmem:[#allocation14_spill] sm:$0xff] }
 0x227   : > { %v1071_v11 = vmul.f32 %v1062_v23, %v1047_v53 }
 0x228   : > { %v1136_v47 = vmul.f32 %v2333_v16, %v1116_v2  ;;  %v1106_v50 = vpop.permute.xlu0 %1105  ;;  %v1197_v35 = vadd.f32 %v1193_v9, %v1173_v21 }
 0x229   : > { %v1115_v32 = vmul.f32 %v2638_v28, %v1106_v50  ;;  %v1099_v17 = vadd.f32 %v1095_v26, %v1071_v11  ;;  %v2848_v11 = vld [vmem:[#allocation15_spill] sm:$0xff] }
 0x22a   : > { %v1140_v55 = vadd.f32 %v1136_v47, %v1100_v29  ;;  %v1233_v23 = vadd.f32 %v1229_v36, %v1197_v35 }
 0x22b   : > { %v1135_v16 = vmul.f32 %v2247_v49, %v1115_v32  ;;  %v1231_v49 = vmul.f32 %v2845_v39, %v1211_v45  ;;  %v1368_v45 = vld [vmem:[%s2817_s7 + $0x18] sm:$0xff] }
 0x22c   : > { %v1176_v48 = vadd.f32 %v1172_v46, %v1140_v55  ;;  %v2849_v55 = vld [vmem:[#allocation17_spill] sm:$0xff] }
 0x22d   : > { %v1139_v40 = vadd.f32 %v1135_v16, %v1099_v17 }
 0x22e   : > { %v1200_v42 = vadd.f32 %v1196_v4, %v1176_v48 }
 0x22f   : > { %v1175_v59 = vadd.f32 %v1171_v31, %v1139_v40 }
 0x230   : > { %v1236_v36 = vadd.f32 %v1232_v52, %v1200_v42 }
 0x231   : > { %v1199_v61 = vadd.f32 %v1195_v41, %v1175_v59 }
 0x233   : > { %v1235_v8 = vadd.f32 %v1231_v49, %v1199_v61 }
 0x234   : > { %v1240_v1 = vpop.permute.xlu1 %1239 }
 0x235   : > { %v1246_v43 = vmul.f32 %v2663_v56, %v1240_v1 }
 0x237   : > { %v1266_v62 = vmul.f32 %v2603_v3, %v1246_v43  ;;  %v2847_v3 = vld [vmem:[#allocation16_spill] sm:$0xff] }
 0x239   : > { %v1270_v10 = vadd.f32 %v1266_v62, %v1234_v57  ;;  %v1292_v57 = vmul.f32 %v2847_v3, %v2583_v18 }
 0x23b   : > { %v1294_v6 = vadd.f32 %v2631_v54, %v1270_v10 }
 0x240   : > { %v1238_v12 = vpop.permute.xlu0 %1237 }
 0x241   : > { %v1245_v30 = vmul.f32 %v2663_v56, %v1238_v12 }
 0x243   : > { %v1265_v7 = vmul.f32 %v2617_v13, %v1245_v30 }
 0x245   : > { %v1269_v20 = vadd.f32 %v1265_v7, %v1233_v23 }
 0x247   : > { %v1293_v60 = vadd.f32 %v2654_v51, %v1269_v20 }
 0x24e   : > { %v1244_v5 = vpop.permute.xlu0 %1243 }
 0x24f   : > { %v1248_v0 = vmul.f32 %v2663_v56, %v1244_v5 }
 0x251   : > { %v1268_v25 = vmul.f32 %v2846_v27, %v1248_v0 }
 0x252   : > { %v1304_v19 = vpop.permute.xlu0 %1303 }
 0x253   : > { %v1272_v9 = vadd.f32 %v1268_v25, %v1236_v36  ;;  %v1308_v54 = vmul.f32 %v2638_v28, %v1304_v19 }
 0x255   : > { %v1296_v53 = vadd.f32 %v1292_v57, %v1272_v9  ;;  %v1328_v14 = vmul.f32 %v2620_v22, %v1308_v54 }
 0x256   : > { %v1300_v2 = vpop.permute.xlu0 %1299 }
 0x257   : > { %v1332_v34 = vadd.f32 %v1328_v14, %v1296_v53  ;;  %v1306_v37 = vmul.f32 %v2638_v28, %v1300_v2 }
 0x259   : > { %v1360_v13 = vadd.f32 %v2656_v63, %v1332_v34  ;;  %v1326_v46 = vmul.f32 %v2633_v58, %v1306_v37  ;;  %v1366_v58 = vld [vmem:[%s2817_s7 + $0x8] sm:$0xff] }
 0x25a   : > { %v1298_v63 = vpop.permute.xlu0 %1297 }
 0x25b   : > { %v1364_v21 = vmax.f32 %v1360_v13, 0.0  ;;  %v1330_v17 = vadd.f32 %v1326_v46, %v1294_v6 }
 0x25d   : > { %1700 = vmatprep.subr.mxu1 %v1364_v21 }
 0x25e   : > { %1701 = vmatpush3.msra.mxu1 %v1364_v21 }
 0x267   : > { %v1376_v40 = vpop.permute.xlu0 %1375 }
 0x269   : > { %v1242_v51 = vpop.permute.xlu1 %1241 }
 0x26a   : > { %v1247_v15 = vmul.f32 %v2663_v56, %v1242_v51  ;;  %v1305_v56 = vmul.f32 %v2638_v28, %v1298_v63 }
 0x26b   : > { %v1391_v49 = vpop.permute.xlu0 %1390 }
 0x26c   : > { %v1267_v29 = vmul.f32 %v2848_v11, %v1247_v15  ;;  %v1325_v23 = vmul.f32 %v2849_v55, %v1305_v56 }
 0x26d   : > { %v1302_v47 = vpop.permute.xlu1 %1301 }
 0x26e   : > { %v1271_v50 = vadd.f32 %v1267_v29, %v1235_v8  ;;  %v1307_v18 = vmul.f32 %v2638_v28, %v1302_v47  ;;  %v1329_v48 = vadd.f32 %v1325_v23, %v1293_v60  ;;  %v1367_v28 = vld [vmem:[%s2817_s7 + $0x10] sm:$0xff] }
 0x270   : > { %v1295_v35 = vadd.f32 %v2614_v33, %v1271_v50  ;;  %v1327_v22 = vmul.f32 %v2625_v38, %v1307_v18 }
 0x272   : > { %v1331_v26 = vadd.f32 %v1327_v22, %v1295_v35 }
 0x274   : > { %v1359_v32 = vadd.f32 %v2658_v24, %v1331_v26 }
 0x276   : > { %v1363_v44 = vmax.f32 %v1359_v32, 0.0 }
 0x278   : > { %1702 = vmatprep.subr.mxu1 %v1363_v44 }
 0x279   : > { %1703 = vmatpush3.msra.mxu1 %v1363_v44 }
 0x27a   : > { %v1345_v16 = vpop.permute.xlu1 %1344 }
 0x27b   : > { %v1358_v33 = vadd.f32 %v1345_v16, %v1330_v17 }
 0x27d   : > { %v1362_v38 = vmax.f32 %v1358_v33, 0.0 }
 0x27e   : > { %v1340_v4 = vpop.permute.xlu1 %1339 }
 0x27f   : > { %v1357_v31 = vadd.f32 %v1340_v4, %v1329_v48  ;;  %1704 = vmatprep.subr.mxu1 %v1362_v38 }
 0x280   : > { %1705 = vmatpush3.msra.mxu1 %v1362_v38 }
 0x281   : > { %v1361_v24 = vmax.f32 %v1357_v31, 0.0 }
 0x282   : > { %v1381_v52 = vpop.permute.xlu1 %1380 }
 0x283   : > { %1706 = vmatprep.subr.mxu1 %v1361_v24 }
 0x284   : > { %1707 = vmatpush3.msra.mxu1 %v1361_v24 }
 0x285   : > { %1709 = vmatmul.mubr.msk.f32.vlgmr.msra.gmra.mxu1 %vm842_vm3, %v1366_v58 }
 0x286   : > { %1711 = vmatprep.mubr.msk.f32.mxu1 %vm842_vm3, %v1367_v28  ;;  %v1386_v43 = vpop.permute.xlu1 %1385 }
 0x289   : > { %1712 = vmatmul.mubr.msk.f32.gmra.mxu1 %vm842_vm3, %v1368_v45 }
 0x345   : > { %v1710_v42 = vpop.f32.mrf.mxu1 }
 0x346   : > { %v1477_v59 = vadd.f32 %v1710_v42, %v1381_v52 }
 0x347   : > { %v1471_v41 = vpop.f32.mrf.mxu1 }
 0x348   : > { %v1491_v36 = vmax.f32 %v1477_v59, 0.0  ;;  %v1472_v39 = vadd.f32 %v1471_v41, %v1376_v40 }
 0x349   : > { %v1713_v61 = vpop.f32.mrf.mxu1 }
 0x34a   : > { %1495 = vst [vmem:[%s372_s20 + $0x8] sm:$0xff] %v1491_v36  ;;  %v1490_v8 = vmax.f32 %v1472_v39, 0.0  ;;  %v1487_v1 = vadd.f32 %v1713_v61, %v1391_v49 }
 0x34b   : > { %v1481_v62 = vpop.f32.mrf.mxu1 }
 0x34c   : > { %1494 = vst [vmem:[%s372_s20] sm:$0xff] %v1490_v8  ;;  %v1493_v10 = vmax.f32 %v1487_v1, 0.0  ;;  %v1482_v6 = vadd.f32 %v1481_v62, %v1386_v43 }
 0x34e   : > { %1497 = vst [vmem:[%s372_s20 + $0x18] sm:$0xff] %v1493_v10  ;;  %v1492_v12 = vmax.f32 %v1482_v6, 0.0 }
 0x350   : > { %1496 = vst [vmem:[%s372_s20 + $0x10] sm:$0xff] %v1492_v12 }
 0x351   : > { %1849 = shalt.err (!%p1846_p9)
}
 0x352   : > { %s1850_s18 = scalar_lea.hbm %s2757_s28, 512  ;;  %s1854_s24 = scalar_lea.hbm %s2819_s9, 2048 }
 0x353   : > { %p1851_p10 = scmp.ne.s32.totalorder %s2757_s28, %s1850_s18  ;;  %p1855_p13 = scmp.lt.s32.totalorder %s2757_s28, %s2819_s9 }
 0x354   : > { %p1856_p0 = scmp.lt.s32.totalorder %s1854_s24, %s1850_s18 }
 0x355   : > { %p1852_p11 = pnand %p1851_p10, %p2053_p3 }
 0x356   : > { %p1857_p1 = por %p1856_p0, %p1855_p13 }
 0x357   : > { %p1853_p12 = pneg %p1852_p11 }
 0x359   : > { %p1858_p2 = pnand %p1857_p1, %p1853_p12 }
 0x35b   : > { %1861 = shalt.err (!%p1858_p2)
}
 0x35c   : > { %s1949_s19 = smov 128   ;;  %s1950_s20 = smov 256  }
 0x35d   : > { %s1951_s15 = smov 8  }
 0x35e   : > { %1714 = dma.vmem_to_hbm [thread:$0]  (%p2053_p3), %s2752_s14, 512, %s2757_s28, %s2759_s30, %s1949_s19, %s1950_s20, %s1951_s15  }
 0x35f PF: > { %s2850_s12 = sld [smem:[#allocation5_spill]]  ;;  %p1720_p4 = scmp.ge.s32.totalorder %s1928_s16, 2 }
 0x361   : > { %p1717_p5 = pnand %p1720_p4, %p2062_p8 }
 0x363   : > { %p1718_p6 = pneg %p1717_p5 }
 0x365   : > { %s1528_s11 = sand.u32 1, %s2850_s12  }
 0x366   : > { %s1529_s23 = scalar_lea.sflag [#allocation3], %s1528_s11 }
 0x367   : > { %1895 = dma.done.wait (%p1718_p6), %s1529_s23, 512  }
 0x368   : > { %1897 = vsyncadd (%p1718_p6), %s1529_s23, 4294966784  ;;  %s22_s16 = sadd.s32 1, %s1928_s16   ;;  %s2852_s27 = sld [smem:[#allocation6_spill]] }
 0x369   : > { %p19_p7 = scmp.ge.s32.totalorder %s22_s16, 6   ;;  %s2853_s11 = sld [smem:[#allocation12_spill]] }
 0x36a   : > { %s2854_s12 = sld [smem:[#allocation7_spill]]  ;;  %s2858_s30 = smov %s1904_s10 }
 0x36b   : > { %s2855_s13 = sld [smem:[#allocation8_spill]]  ;;  %21 = sbr.rel (!%p19_p7) target bundleno = 5 (0x5), region = 95 }
 0x36c   : > { %s2856_s14 = sld [smem:[#allocation9_spill]] }
 0x36d   : > { %s2857_s15 = sld [smem:[#allocation10_spill]] }
 0x36e   : > { %s2859_s10 = smov %s2852_s27 }
 0x370   :  { %1534 = vsyncpa [#allocation3], 1 }
 0x371   :  { %1536 = vsyncpa [#allocation3 + $0x1], 1 }

</bundles_post_ra>
